<compile_context>
chip_gen: v7x
topology: tpu7x:2x2x1
jax: 0.10.0
libtpu: 0.0.40
codegen_flags: <defaults>
</compile_context>

<pallas_src>
import functools
import math

import jax
import jax.numpy as jnp
from jax.experimental import pallas as pl
from jax.experimental.pallas import tpu as pltpu

NEG_SLOPE = 0.01   # torch F.leaky_relu default
L2_EPS = 1e-12     # torch F.normalize default


# ------------------------------ small helpers -------------------------------

def _leaky_relu(x):
    return jnp.where(x >= 0, x, NEG_SLOPE * x)


def _l2norm(x):
    # F.normalize(x, p=2, dim=1, eps=1e-12) == x / max(||x||, eps)
    #                                       == x * rsqrt(max(||x||^2, eps^2))
    ss = jnp.sum(x * x, axis=-1, keepdims=True)
    return x * jax.lax.rsqrt(jnp.maximum(ss, L2_EPS * L2_EPS))


def _mxu(a, b):
    # bf16 MXU operands, f32 accumulation (astype is a no-op if already bf16).
    return jnp.dot(a.astype(jnp.bfloat16), b.astype(jnp.bfloat16),
                   preferred_element_type=jnp.float32)


def _const_spec(shape):
    zeros = (0,) * len(shape)
    return pl.BlockSpec(shape, lambda *_: zeros)


def _pick_tile(n, pref):
    # n is a multiple of 128, so 128 always divides.
    for t in (pref, 512, 384, 256, 128):
        if t <= n and n % t == 0:
            return t
    return n


def _vmem_limit(tile_bytes, resident_bytes, scratch_bytes=0):
    # double-buffered tiles + resident params + scratch + headroom,
    # clamped below the physical per-core VMEM of the current generation.
    need = 2 * tile_bytes + 2 * resident_bytes + scratch_bytes + (4 << 20)
    try:
        cap = int(getattr(pltpu.get_tpu_info(), "vmem_capacity_bytes", 0))
    except Exception:
        cap = 0
    if cap <= 0:
        cap = 64 << 20  # conservative fallback (v7x per-core size)
    return int(min(max(need, 16 << 20), (cap * 3) // 4))


# ------------------------------- row kernels ---------------------------------
# Per node-row tile: packed x @ [W_conv | W_lin] for each modality, write the
# conv halves lane-concatenated (bf16) for the fused adjacency GEMM, and
# x_hat = leaky_relu(xW_lin + b) + id.

def _row_body(xv, xt, id_emb, vcl_w_ref, vlin_b_ref, tcl_w_ref, tlin_b_ref,
              xw_ref, xhatv_ref, xhatt_ref, dv_conv, dt_conv):
    xwv = _mxu(xv, vcl_w_ref[...])          # (tm, dv_conv + dim_x)
    xwt = _mxu(xt, tcl_w_ref[...])          # (tm, dt_conv + dim_x)
    # conv halves, lane-concatenated [XWv | XWt]; bf16 (only feeds the MXU).
    xw_ref[:, :dv_conv] = xwv[:, :dv_conv].astype(jnp.bfloat16)
    xw_ref[:, dv_conv:] = xwt[:, :dt_conv].astype(jnp.bfloat16)
    xhatv_ref[...] = _leaky_relu(xwv[:, dv_conv:] + vlin_b_ref[...]) + id_emb
    xhatt_ref[...] = _leaky_relu(xwt[:, dt_conv:] + tlin_b_ref[...]) + id_emb


def row1_kernel(featv_ref, featt_ref, id_ref, mlp_w_ref, mlp_b_ref,
                vcl_w_ref, vlin_b_ref, tcl_w_ref, tlin_b_ref,
                xw_ref, xhatv_ref, xhatt_ref, *, dv_conv, dt_conv):
    # layer-1 row work also fuses the v-path MLP and both L2 normalizations.
    xv = _l2norm(_mxu(featv_ref[...], mlp_w_ref[...]) + mlp_b_ref[...])
    xt = _l2norm(featt_ref[...])
    _row_body(xv, xt, id_ref[...], vcl_w_ref, vlin_b_ref, tcl_w_ref,
              tlin_b_ref, xw_ref, xhatv_ref, xhatt_ref, dv_conv, dt_conv)


def row2_kernel(xv_ref, xt_ref, id_ref, vcl_w_ref, vlin_b_ref,
                tcl_w_ref, tlin_b_ref,
                xw_ref, xhatv_ref, xhatt_ref, *, dv_conv, dt_conv):
    _row_body(xv_ref[...], xt_ref[...], id_ref[...],
              vcl_w_ref, vlin_b_ref, tcl_w_ref, tlin_b_ref,
              xw_ref, xhatv_ref, xhatt_ref, dv_conv, dt_conv)


# ---------------------------- aggregation kernel -----------------------------
# grid = (dst_tiles, src_tiles); src is a reduction accumulated in VMEM.
# One fused A @ [XWv | XWt] GEMM (>=256 output lanes), then per-modality
# h @ W_g + b_g + x_hat, leaky_relu, and optionally rep = (v + t) / 2.

def agg_kernel(adj_ref, xw_ref, xhatv_ref, xhatt_ref,
               vg_w_ref, vg_b_ref, tg_w_ref, tg_b_ref,
               *out_and_scratch, dv_conv, with_rep):
    if with_rep:
        outv_ref, outt_ref, rep_ref, acc_ref = out_and_scratch
    else:
        outv_ref, outt_ref, acc_ref = out_and_scratch
        rep_ref = None

    j = pl.program_id(1)

    @pl.when(j == 0)
    def _():
        acc_ref[...] = jnp.zeros_like(acc_ref)

    # scatter-add over edges == dense A[dst_tile, src_tile] @ XW[src_tile]
    acc_ref[...] += jnp.dot(adj_ref[...], xw_ref[...],
                            preferred_element_type=jnp.float32)

    @pl.when(j == pl.num_programs(1) - 1)
    def _():
        h = _leaky_relu(acc_ref[...])
        hv = h[:, :dv_conv]
        ht = h[:, dv_conv:]
        xv = _leaky_relu(_mxu(hv, vg_w_ref[...]) + vg_b_ref[...] + xhatv_ref[...])
        xt = _leaky_relu(_mxu(ht, tg_w_ref[...]) + tg_b_ref[...] + xhatt_ref[...])
        outv_ref[...] = xv
        outt_ref[...] = xt
        if with_rep:
            rep_ref[...] = 0.5 * (xv + xt)


# ------------------------------- call wrappers --------------------------------

def _call_row_kernel(kernel, row_inputs, resident_params, n, tm, dim_x, d_cat):
    grid = (n // tm,)
    in_specs = [pl.BlockSpec((tm, a.shape[1]), lambda i: (i, 0))
                for a in row_inputs]
    in_specs += [_const_spec(p.shape) for p in resident_params]
    out_specs = (
        pl.BlockSpec((tm, d_cat), lambda i: (i, 0)),
        pl.BlockSpec((tm, dim_x), lambda i: (i, 0)),
        pl.BlockSpec((tm, dim_x), lambda i: (i, 0)),
    )
    out_shape = (
        jax.ShapeDtypeStruct((n, d_cat), jnp.bfloat16),
        jax.ShapeDtypeStruct((n, dim_x), jnp.float32),
        jax.ShapeDtypeStruct((n, dim_x), jnp.float32),
    )
    tile_bytes = sum(tm * a.shape[1] * a.dtype.itemsize for a in row_inputs)
    tile_bytes += tm * d_cat * 2 + 2 * tm * dim_x * 4
    res_bytes = sum(int(p.size) * p.dtype.itemsize for p in resident_params)

    return pl.pallas_call(
        kernel,
        out_shape=out_shape,
        grid_spec=pltpu.PrefetchScalarGridSpec(
            num_scalar_prefetch=0, grid=grid,
            in_specs=in_specs, out_specs=out_specs),
        compiler_params=pltpu.CompilerParams(
            dimension_semantics=("parallel",),
            vmem_limit_bytes=_vmem_limit(tile_bytes, res_bytes)),
    )(*row_inputs, *resident_params)


def _call_agg_kernel(adj, xw, xhatv, xhatt, vg_w, vg_b, tg_w, tg_b,
                     *, dv_conv, with_rep, tm_d, tk_s, dim_x):
    n, d_cat = xw.shape
    grid = (n // tm_d, n // tk_s)
    # TODO(synk): if the adj-tile DMA is still exposed on v5e/v6e, bump its
    # pipeline depth via pipeline_mode=pl.Buffered(3) (keep 2 on v7x / 64 MiB).
    in_specs = [
        pl.BlockSpec((tm_d, tk_s), lambda i, j: (i, j)),    # adj tile
        pl.BlockSpec((tk_s, d_cat), lambda i, j: (j, 0)),   # [XWv|XWt] src rows
        pl.BlockSpec((tm_d, dim_x), lambda i, j: (i, 0)),   # x_hat_v dst rows
        pl.BlockSpec((tm_d, dim_x), lambda i, j: (i, 0)),   # x_hat_t dst rows
        _const_spec(vg_w.shape), _const_spec(vg_b.shape),
        _const_spec(tg_w.shape), _const_spec(tg_b.shape),
    ]
    out_spec = pl.BlockSpec((tm_d, dim_x), lambda i, j: (i, 0))
    n_out = 3 if with_rep else 2
    out_specs = (out_spec,) * n_out
    out_shape = tuple(jax.ShapeDtypeStruct((n, dim_x), jnp.float32)
                      for _ in range(n_out))

    tile_bytes = (tm_d * tk_s * 2 + tk_s * d_cat * 2
                  + 2 * tm_d * dim_x * 4 + n_out * tm_d * dim_x * 4)
    res_bytes = sum(int(p.size) * p.dtype.itemsize
                    for p in (vg_w, vg_b, tg_w, tg_b))
    scratch_bytes = tm_d * d_cat * 4

    flops = 2 * n * n * d_cat + 2 * n * d_cat * dim_x
    bytes_accessed = (int(adj.size) * 2 + int(xw.size) * 2
                      + (int(xhatv.size) + int(xhatt.size)) * 4
                      + n_out * n * dim_x * 4 + res_bytes)

    return pl.pallas_call(
        functools.partial(agg_kernel, dv_conv=dv_conv, with_rep=with_rep),
        out_shape=out_shape,
        grid_spec=pltpu.PrefetchScalarGridSpec(
            num_scalar_prefetch=0, grid=grid,
            in_specs=in_specs, out_specs=out_specs,
            scratch_shapes=[pltpu.VMEM((tm_d, d_cat), jnp.float32)]),
        compiler_params=pltpu.CompilerParams(
            dimension_semantics=("parallel", "arbitrary"),
            vmem_limit_bytes=_vmem_limit(tile_bytes, res_bytes, scratch_bytes)),
        cost_estimate=pl.CostEstimate(
            flops=int(flops), transcendentals=0,
            bytes_accessed=int(bytes_accessed)),
    )(adj, xw, xhatv, xhatt, vg_w, vg_b, tg_w, tg_b)


# ------------------------------- full forward --------------------------------

def net_forward(feat_v, feat_t, sub_id, adj, params,
                *, row_tile=256, dst_tile=256, src_tile=512):
    n = adj.shape[0]                       # padded node count (multiple of 128)
    dim_x = sub_id.shape[1]
    dl = params["mlp_w"].shape[1]          # dim_latent (v path)
    dt_feat = feat_t.shape[1]

    tm_r = _pick_tile(n, row_tile)
    tm_d = _pick_tile(n, dst_tile)
    tk_s = _pick_tile(n, src_tile)

    # ---------------------------- GCN layer 1 ------------------------------
    xw1, xhv1, xht1 = _call_row_kernel(
        functools.partial(row1_kernel, dv_conv=dl, dt_conv=dt_feat),
        [feat_v, feat_t, sub_id],
        [params["mlp_w"], params["mlp_b"],
         params["v_cl1_w"], params["v_lin1_b"],
         params["t_cl1_w"], params["t_lin1_b"]],
        n, tm_r, dim_x, dl + dt_feat)
    xv1, xt1 = _call_agg_kernel(
        adj, xw1, xhv1, xht1,
        params["v_g1_w"], params["v_g1_b"], params["t_g1_w"], params["t_g1_b"],
        dv_conv=dl, with_rep=False, tm_d=tm_d, tk_s=tk_s, dim_x=dim_x)

    # ---------------------------- GCN layer 2 ------------------------------
    xw2, xhv2, xht2 = _call_row_kernel(
        functools.partial(row2_kernel, dv_conv=dim_x, dt_conv=dim_x),
        [xv1, xt1, sub_id],
        [params["v_cl2_w"], params["v_lin2_b"],
         params["t_cl2_w"], params["t_lin2_b"]],
        n, tm_r, dim_x, 2 * dim_x)
    v_rep, t_rep, rep = _call_agg_kernel(
        adj, xw2, xhv2, xht2,
        params["v_g2_w"], params["v_g2_b"], params["t_g2_w"], params["t_g2_b"],
        dv_conv=dim_x, with_rep=True, tm_d=tm_d, tk_s=tk_s, dim_x=dim_x)

    return rep, v_rep, t_rep


# ------------------------- graph-static preprocessing -------------------------

def _pad_rows(x, n_pad):
    pad = n_pad - x.shape[0]
    return x if pad == 0 else jnp.pad(x, ((0, pad), (0, 0)))


def preprocess_graph(feat, edge_index, id_embedding, v_dim):
    """Hoisted, graph-static work: unique/gather + dense adjacency build.

    Run once and cache the outputs when the graph does not change between
    forward calls (these XLA ops would otherwise dominate for real graphs).
    """
    n = id_embedding.shape[0]
    n_pad = ((n + 127) // 128) * 128       # lane-dense adjacency / rows

    # torch.unique(edge_index) + id row gather (assumes batch covers all rows).
    batch_nodes = jnp.unique(edge_index, size=n)
    sub_id = jnp.take(id_embedding, batch_nodes, axis=0)

    feat_v = feat[:, :v_dim]
    feat_t = feat[:, v_dim:]

    # Dense adjacency reproducing MessagePassing(aggr='add'): A[dst, src] += 1.
    # bf16 keeps integer multiplicities (< 256) exact and halves MXU bytes.
    src, dst = edge_index[0], edge_index[1]
    adj = (jnp.zeros((n_pad, n_pad), jnp.float32)
           .at[dst, src].add(1.0).astype(jnp.bfloat16))
    # TODO(synk): for realistic graph sizes, replace the dense N x N adjacency
    # with a CSR / scalar-prefetch (PrefetchScalarGridSpec) gather of XW rows.

    return (_pad_rows(feat_v, n_pad), _pad_rows(feat_t, n_pad),
            _pad_rows(sub_id, n_pad), adj, n)


# -------------------------------- parameters ----------------------------------

def init_params(key, v_feat_dim, t_feat_dim, dim_x, dim_latent=256):
    ks = iter(jax.random.split(key, 32))

    def xavier(shape):
        fan_in, fan_out = shape
        std = math.sqrt(2.0 / (fan_in + fan_out))
        return std * jax.random.normal(next(ks), shape, jnp.float32)

    def bias(n):
        return 0.01 * jax.random.normal(next(ks), (1, n), jnp.float32)

    def bf16(w):
        return w.astype(jnp.bfloat16)

    # v_gcn (dim_latent path). nn.Linear weights stored transposed as (in, out).
    mlp_w = xavier((v_feat_dim, dim_latent))
    conv1_v = xavier((dim_latent, dim_latent))
    lin1_v = xavier((dim_latent, dim_x))
    g1_v = xavier((dim_latent, dim_x))
    conv2_v = xavier((dim_x, dim_x))
    lin2_v = xavier((dim_x, dim_x))
    g2_v = xavier((dim_x, dim_x))

    # t_gcn (no dim_latent): conv1 is dim_feat -> dim_feat.
    conv1_t = xavier((t_feat_dim, t_feat_dim))
    lin1_t = xavier((t_feat_dim, dim_x))
    g1_t = xavier((t_feat_dim, dim_x))
    conv2_t = xavier((dim_x, dim_x))
    lin2_t = xavier((dim_x, dim_x))
    g2_t = xavier((dim_x, dim_x))

    return {
        # MXU operands stored bf16 (f32 accumulation in-kernel); biases f32.
        "mlp_w": bf16(mlp_w), "mlp_b": bias(dim_latent),
        # conv & linear weights packed along the output axis -> one wide GEMM.
        "v_cl1_w": bf16(jnp.concatenate([conv1_v, lin1_v], axis=1)),
        "v_lin1_b": bias(dim_x),
        "v_g1_w": bf16(g1_v), "v_g1_b": bias(dim_x),
        "v_cl2_w": bf16(jnp.concatenate([conv2_v, lin2_v], axis=1)),
        "v_lin2_b": bias(dim_x),
        "v_g2_w": bf16(g2_v), "v_g2_b": bias(dim_x),
        "t_cl1_w": bf16(jnp.concatenate([conv1_t, lin1_t], axis=1)),
        "t_lin1_b": bias(dim_x),
        "t_g1_w": bf16(g1_t), "t_g1_b": bias(dim_x),
        "t_cl2_w": bf16(jnp.concatenate([conv2_t, lin2_t], axis=1)),
        "t_lin2_b": bias(dim_x),
        "t_g2_w": bf16(g2_t), "t_g2_b": bias(dim_x),
    }


# --------------------------- pure-JAX reference -------------------------------

def reference_forward(feat_v, feat_t, sub_id, adj, params, dim_latent):
    dim_x = sub_id.shape[1]

    def layer(x, cl_w, lin_b, g_w, g_b, d_conv):
        xw = _mxu(x, cl_w)
        h = _leaky_relu(_mxu(adj, xw[:, :d_conv]))
        x_hat = _leaky_relu(xw[:, d_conv:] + lin_b) + sub_id
        return _leaky_relu(_mxu(h, g_w) + g_b + x_hat)

    xv = _l2norm(_mxu(feat_v, params["mlp_w"]) + params["mlp_b"])
    xt = _l2norm(feat_t)
    xv = layer(xv, params["v_cl1_w"], params["v_lin1_b"],
               params["v_g1_w"], params["v_g1_b"], dim_latent)
    xt = layer(xt, params["t_cl1_w"], params["t_lin1_b"],
               params["t_g1_w"], params["t_g1_b"], feat_t.shape[1])
    xv = layer(xv, params["v_cl2_w"], params["v_lin2_b"],
               params["v_g2_w"], params["v_g2_b"], dim_x)
    xt = layer(xt, params["t_cl2_w"], params["t_lin2_b"],
               params["t_g2_w"], params["t_g2_b"], dim_x)
    return 0.5 * (xv + xt), xv, xt


# ----------------------------------- main --------------------------------------

if __name__ == "__main__":
    N = 64            # nodes (padded to 128 internally)
    V_DIM = 128       # v_feat_dim
    T_DIM = 128       # t_feat_dim
    DIM_X = 128       # dim_x (id/output dim)
    DIM_LATENT = 256  # fixed by Net for v_gcn
    E_RAND = 192      # random edges (plus N self-loops)

    key = jax.random.PRNGKey(0)
    k_feat, k_id, k_src, k_dst, k_par = jax.random.split(key, 5)

    feat = jax.random.normal(k_feat, (N, V_DIM + T_DIM), jnp.float32)
    id_embedding = jax.random.normal(k_id, (N, DIM_X), jnp.float32)

    # edge_index (2, E), torch-geometric: row0 = source, row1 = target.
    # Self-loops guarantee torch.unique(edge_index) covers all N nodes.
    src = jnp.concatenate([jnp.arange(N),
                           jax.random.randint(k_src, (E_RAND,), 0, N)])
    dst = jnp.concatenate([jnp.arange(N),
                           jax.random.randint(k_dst, (E_RAND,), 0, N)])
    edge_index = jnp.stack([src, dst]).astype(jnp.int32)

    params = init_params(k_par, V_DIM, T_DIM, DIM_X, DIM_LATENT)

    # Graph-static preprocessing, done once (cacheable across forward calls).
    feat_v, feat_t, sub_id, adj, n_real = preprocess_graph(
        feat, edge_index, id_embedding, V_DIM)

    rep, v_rep, t_rep = net_forward(feat_v, feat_t, sub_id, adj, params)
    rep = jax.block_until_ready(rep)

    rep, v_rep, t_rep = rep[:n_real], v_rep[:n_real], t_rep[:n_real]

    # Correctness check against a pure-JAX reference with the same bf16/f32
    # mixed precision.
    rep_ref, _, _ = reference_forward(feat_v, feat_t, sub_id, adj, params,
                                      DIM_LATENT)
    err = float(jnp.max(jnp.abs(rep - rep_ref[:n_real])))

    assert rep.shape == (N, DIM_X)
    assert v_rep.shape == (N, DIM_X) and t_rep.shape == (N, DIM_X)
    assert bool(jnp.all(jnp.isfinite(rep)))
    assert err < 3e-2, f"mismatch vs reference: {err}"
    print("KERNEL_OK")
</pallas_src>

<mosaic_0001>
module attributes {stable_mosaic.version = 11 : i64} {
  func.func @row1_kernel(%arg0: i32, %arg1: memref<128x128xf32, #tpu.memory_space<vmem>>, %arg2: memref<128x128xf32, #tpu.memory_space<vmem>>, %arg3: memref<128x128xf32, #tpu.memory_space<vmem>>, %arg4: memref<128x256xbf16, #tpu.memory_space<vmem>>, %arg5: memref<1x256xf32, #tpu.memory_space<vmem>>, %arg6: memref<256x384xbf16, #tpu.memory_space<vmem>>, %arg7: memref<1x128xf32, #tpu.memory_space<vmem>>, %arg8: memref<128x256xbf16, #tpu.memory_space<vmem>>, %arg9: memref<1x128xf32, #tpu.memory_space<vmem>>, %arg10: memref<128x384xbf16, #tpu.memory_space<vmem>>, %arg11: memref<128x128xf32, #tpu.memory_space<vmem>>, %arg12: memref<128x128xf32, #tpu.memory_space<vmem>>) attributes {dimension_semantics = [#tpu.dimension_semantics<parallel>], iteration_bounds = array<i64: 1>, scalar_prefetch = 0 : i64, scratch_operands = 0 : i64, tpu.core_type = #tpu.core_type<tc>, window_params = [{transform_indices = @transform_0, window_bounds = array<i64: 128, 128>}, {transform_indices = @transform_1, window_bounds = array<i64: 128, 128>}, {transform_indices = @transform_2, window_bounds = array<i64: 128, 128>}, {pipeline_mode = #tpu.pipeline_mode<synchronous>, transform_indices = @transform_3, window_bounds = array<i64: 128, 256>}, {pipeline_mode = #tpu.pipeline_mode<synchronous>, transform_indices = @transform_4, window_bounds = array<i64: 1, 256>}, {pipeline_mode = #tpu.pipeline_mode<synchronous>, transform_indices = @transform_5, window_bounds = array<i64: 256, 384>}, {pipeline_mode = #tpu.pipeline_mode<synchronous>, transform_indices = @transform_6, window_bounds = array<i64: 1, 128>}, {pipeline_mode = #tpu.pipeline_mode<synchronous>, transform_indices = @transform_7, window_bounds = array<i64: 128, 256>}, {pipeline_mode = #tpu.pipeline_mode<synchronous>, transform_indices = @transform_8, window_bounds = array<i64: 1, 128>}, {transform_indices = @transform_9, window_bounds = array<i64: 128, 384>}, {transform_indices = @transform_10, window_bounds = array<i64: 128, 128>}, {transform_indices = @transform_11, window_bounds = array<i64: 128, 128>}]} {
    %c0 = arith.constant 0 : index
    %c0_0 = arith.constant 0 : index
    %0 = vector.load %arg1[%c0, %c0_0] : memref<128x128xf32, #tpu.memory_space<vmem>>, vector<128x128xf32>
    %c0_1 = arith.constant 0 : index
    %c0_2 = arith.constant 0 : index
    %1 = vector.load %arg4[%c0_1, %c0_2] : memref<128x256xbf16, #tpu.memory_space<vmem>>, vector<128x256xbf16>
    %2 = arith.truncf %0 : vector<128x128xf32> to vector<128x128xbf16>
    %cst = arith.constant dense<0.000000e+00> : vector<128x256xf32>
    %3 = tpu.matmul %2, %1, %cst {dimension_numbers = #tpu.dot_dimension_numbers<[1], [0], [0], [1], [0, 0, 1, 1], [], []>} : vector<128x128xbf16>, vector<128x256xbf16>, vector<128x256xf32> -> vector<128x256xf32>
    %c0_3 = arith.constant 0 : index
    %c0_4 = arith.constant 0 : index
    %4 = vector.load %arg5[%c0_3, %c0_4] : memref<1x256xf32, #tpu.memory_space<vmem>>, vector<1x256xf32>
    %5 = vector.broadcast %4 : vector<1x256xf32> to vector<128x256xf32>
    %6 = arith.addf %3, %5 : vector<128x256xf32>
    %7 = arith.mulf %6, %6 : vector<128x256xf32>
    %cst_5 = arith.constant dense<0.000000e+00> : vector<128xf32>
    %8 = vector.multi_reduction <add>, %7, %cst_5 [1] : vector<128x256xf32> to vector<128xf32>
    %9 = vector.shape_cast %8 : vector<128xf32> to vector<128x1xf32>
    %cst_6 = arith.constant 1.000000e-24 : f32
    %10 = vector.broadcast %cst_6 : f32 to vector<128x1xf32>
    %11 = arith.maximumf %9, %10 : vector<128x1xf32>
    %12 = math.rsqrt %11 : vector<128x1xf32>
    %13 = vector.broadcast %12 : vector<128x1xf32> to vector<128x256xf32>
    %14 = arith.mulf %6, %13 : vector<128x256xf32>
    %c0_7 = arith.constant 0 : index
    %c0_8 = arith.constant 0 : index
    %15 = vector.load %arg2[%c0_7, %c0_8] : memref<128x128xf32, #tpu.memory_space<vmem>>, vector<128x128xf32>
    %16 = arith.mulf %15, %15 : vector<128x128xf32>
    %cst_9 = arith.constant dense<0.000000e+00> : vector<128xf32>
    %17 = vector.multi_reduction <add>, %16, %cst_9 [1] : vector<128x128xf32> to vector<128xf32>
    %18 = vector.shape_cast %17 : vector<128xf32> to vector<128x1xf32>
    %cst_10 = arith.constant 1.000000e-24 : f32
    %19 = vector.broadcast %cst_10 : f32 to vector<128x1xf32>
    %20 = arith.maximumf %18, %19 : vector<128x1xf32>
    %21 = math.rsqrt %20 : vector<128x1xf32>
    %22 = vector.broadcast %21 : vector<128x1xf32> to vector<128x128xf32>
    %23 = arith.mulf %15, %22 : vector<128x128xf32>
    %c0_11 = arith.constant 0 : index
    %c0_12 = arith.constant 0 : index
    %24 = vector.load %arg3[%c0_11, %c0_12] : memref<128x128xf32, #tpu.memory_space<vmem>>, vector<128x128xf32>
    %c0_13 = arith.constant 0 : index
    %c0_14 = arith.constant 0 : index
    %25 = vector.load %arg6[%c0_13, %c0_14] : memref<256x384xbf16, #tpu.memory_space<vmem>>, vector<256x384xbf16>
    %26 = arith.truncf %14 : vector<128x256xf32> to vector<128x256xbf16>
    %cst_15 = arith.constant dense<0.000000e+00> : vector<128x384xf32>
    %27 = tpu.matmul %26, %25, %cst_15 {dimension_numbers = #tpu.dot_dimension_numbers<[1], [0], [0], [1], [0, 0, 1, 1], [], []>} : vector<128x256xbf16>, vector<256x384xbf16>, vector<128x384xf32> -> vector<128x384xf32>
    %c0_16 = arith.constant 0 : index
    %c0_17 = arith.constant 0 : index
    %28 = vector.load %arg8[%c0_16, %c0_17] : memref<128x256xbf16, #tpu.memory_space<vmem>>, vector<128x256xbf16>
    %29 = arith.truncf %23 : vector<128x128xf32> to vector<128x128xbf16>
    %cst_18 = arith.constant dense<0.000000e+00> : vector<128x256xf32>
    %30 = tpu.matmul %29, %28, %cst_18 {dimension_numbers = #tpu.dot_dimension_numbers<[1], [0], [0], [1], [0, 0, 1, 1], [], []>} : vector<128x128xbf16>, vector<128x256xbf16>, vector<128x256xf32> -> vector<128x256xf32>
    %31 = vector.extract_strided_slice %27 {offsets = [0, 0], sizes = [128, 256], strides = [1, 1]} : vector<128x384xf32> to vector<128x256xf32>
    %32 = arith.truncf %31 : vector<128x256xf32> to vector<128x256xbf16>
    %c0_19 = arith.constant 0 : index
    %c0_20 = arith.constant 0 : index
    %33 = vector.load %arg10[%c0_19, %c0_20] : memref<128x384xbf16, #tpu.memory_space<vmem>>, vector<128x256xbf16>
    tpu.vector_store %arg10[%c0_19, %c0_20], %32 {strides = array<i32>} : memref<128x384xbf16, #tpu.memory_space<vmem>>, vector<128x256xbf16>,
    %34 = vector.extract_strided_slice %30 {offsets = [0, 0], sizes = [128, 128], strides = [1, 1]} : vector<128x256xf32> to vector<128x128xf32>
    %35 = arith.truncf %34 : vector<128x128xf32> to vector<128x128xbf16>
    %c0_21 = arith.constant 0 : index
    %c256 = arith.constant 256 : index
    %36 = vector.load %arg10[%c0_21, %c256] : memref<128x384xbf16, #tpu.memory_space<vmem>>, vector<128x128xbf16>
    tpu.vector_store %arg10[%c0_21, %c256], %35 {strides = array<i32>} : memref<128x384xbf16, #tpu.memory_space<vmem>>, vector<128x128xbf16>,
    %37 = vector.extract_strided_slice %27 {offsets = [0, 256], sizes = [128, 128], strides = [1, 1]} : vector<128x384xf32> to vector<128x128xf32>
    %c0_22 = arith.constant 0 : index
    %c0_23 = arith.constant 0 : index
    %38 = vector.load %arg7[%c0_22, %c0_23] : memref<1x128xf32, #tpu.memory_space<vmem>>, vector<1x128xf32>
    %39 = vector.broadcast %38 : vector<1x128xf32> to vector<128x128xf32>
    %40 = arith.addf %37, %39 : vector<128x128xf32>
    %cst_24 = arith.constant 0.000000e+00 : f32
    %41 = vector.broadcast %cst_24 : f32 to vector<128x128xf32>
    %42 = arith.cmpf oge, %40, %41 : vector<128x128xf32>
    %cst_25 = arith.constant 0.00999999977 : f32
    %43 = vector.broadcast %cst_25 : f32 to vector<128x128xf32>
    %44 = arith.mulf %43, %40 : vector<128x128xf32>
    %45 = arith.select %42, %40, %44 : vector<128x128xi1>, vector<128x128xf32>
    %46 = arith.addf %45, %24 : vector<128x128xf32>
    %c0_26 = arith.constant 0 : index
    %c0_27 = arith.constant 0 : index
    %47 = vector.load %arg11[%c0_26, %c0_27] : memref<128x128xf32, #tpu.memory_space<vmem>>, vector<128x128xf32>
    tpu.vector_store %arg11[%c0_26, %c0_27], %46 {strides = array<i32>} : memref<128x128xf32, #tpu.memory_space<vmem>>, vector<128x128xf32>,
    %48 = vector.extract_strided_slice %30 {offsets = [0, 128], sizes = [128, 128], strides = [1, 1]} : vector<128x256xf32> to vector<128x128xf32>
    %c0_28 = arith.constant 0 : index
    %c0_29 = arith.constant 0 : index
    %49 = vector.load %arg9[%c0_28, %c0_29] : memref<1x128xf32, #tpu.memory_space<vmem>>, vector<1x128xf32>
    %50 = vector.broadcast %49 : vector<1x128xf32> to vector<128x128xf32>
    %51 = arith.addf %48, %50 : vector<128x128xf32>
    %cst_30 = arith.constant 0.000000e+00 : f32
    %52 = vector.broadcast %cst_30 : f32 to vector<128x128xf32>
    %53 = arith.cmpf oge, %51, %52 : vector<128x128xf32>
    %cst_31 = arith.constant 0.00999999977 : f32
    %54 = vector.broadcast %cst_31 : f32 to vector<128x128xf32>
    %55 = arith.mulf %54, %51 : vector<128x128xf32>
    %56 = arith.select %53, %51, %55 : vector<128x128xi1>, vector<128x128xf32>
    %57 = arith.addf %56, %24 : vector<128x128xf32>
    %c0_32 = arith.constant 0 : index
    %c0_33 = arith.constant 0 : index
    %58 = vector.load %arg12[%c0_32, %c0_33] : memref<128x128xf32, #tpu.memory_space<vmem>>, vector<128x128xf32>
    tpu.vector_store %arg12[%c0_32, %c0_33], %57 {strides = array<i32>} : memref<128x128xf32, #tpu.memory_space<vmem>>, vector<128x128xf32>,
    return
  }
  func.func @transform_0(%arg0: i32) -> (i32, i32) {
    %c0_i32 = arith.constant 0 : i32
    %c0_i32_0 = arith.constant 0 : i32
    return %arg0, %c0_i32 : i32, i32
  }
  func.func @transform_1(%arg0: i32) -> (i32, i32) {
    %c0_i32 = arith.constant 0 : i32
    %c0_i32_0 = arith.constant 0 : i32
    return %arg0, %c0_i32 : i32, i32
  }
  func.func @transform_2(%arg0: i32) -> (i32, i32) {
    %c0_i32 = arith.constant 0 : i32
    %c0_i32_0 = arith.constant 0 : i32
    return %arg0, %c0_i32 : i32, i32
  }
  func.func @transform_3(%arg0: i32) -> (i32, i32) {
    %c0_i32 = arith.constant 0 : i32
    %c0_i32_0 = arith.constant 0 : i32
    %c0_i32_1 = arith.constant 0 : i32
    return %c0_i32, %c0_i32_0 : i32, i32
  }
  func.func @transform_4(%arg0: i32) -> (i32, i32) {
    %c0_i32 = arith.constant 0 : i32
    %c0_i32_0 = arith.constant 0 : i32
    %c0_i32_1 = arith.constant 0 : i32
    return %c0_i32, %c0_i32_0 : i32, i32
  }
  func.func @transform_5(%arg0: i32) -> (i32, i32) {
    %c0_i32 = arith.constant 0 : i32
    %c0_i32_0 = arith.constant 0 : i32
    %c0_i32_1 = arith.constant 0 : i32
    return %c0_i32, %c0_i32_0 : i32, i32
  }
  func.func @transform_6(%arg0: i32) -> (i32, i32) {
    %c0_i32 = arith.constant 0 : i32
    %c0_i32_0 = arith.constant 0 : i32
    %c0_i32_1 = arith.constant 0 : i32
    return %c0_i32, %c0_i32_0 : i32, i32
  }
  func.func @transform_7(%arg0: i32) -> (i32, i32) {
    %c0_i32 = arith.constant 0 : i32
    %c0_i32_0 = arith.constant 0 : i32
    %c0_i32_1 = arith.constant 0 : i32
    return %c0_i32, %c0_i32_0 : i32, i32
  }
  func.func @transform_8(%arg0: i32) -> (i32, i32) {
    %c0_i32 = arith.constant 0 : i32
    %c0_i32_0 = arith.constant 0 : i32
    %c0_i32_1 = arith.constant 0 : i32
    return %c0_i32, %c0_i32_0 : i32, i32
  }
  func.func @transform_9(%arg0: i32) -> (i32, i32) {
    %c0_i32 = arith.constant 0 : i32
    %c0_i32_0 = arith.constant 0 : i32
    return %arg0, %c0_i32 : i32, i32
  }
  func.func @transform_10(%arg0: i32) -> (i32, i32) {
    %c0_i32 = arith.constant 0 : i32
    %c0_i32_0 = arith.constant 0 : i32
    return %arg0, %c0_i32 : i32, i32
  }
  func.func @transform_11(%arg0: i32) -> (i32, i32) {
    %c0_i32 = arith.constant 0 : i32
    %c0_i32_0 = arith.constant 0 : i32
    return %arg0, %c0_i32 : i32, i32
  }
}

</mosaic_0001>

<bundles_post_ra>
// kernel: tpu_custom_call.1
= control target key start
LH: loop header
LB: loop body
LE: loop exit
PB: predicated region body
PF: predicated region fallthrough
CT: control target
= control target key end

     0   :  { %17 = vsyncpa [#allocation3], 0  ;;  %s3101_s0 = inlined_call_operand.hbm [shape: f32[128,128], index: 0, kind: input, shape index: {}]   ;;  %s3102_s1 = inlined_call_operand.hbm [shape: f32[128,128], index: 1, kind: input, shape index: {}]   ;;  %s3103_s2 = inlined_call_operand.hbm [shape: f32[128,128], index: 2, kind: input, shape index: {}]   ;;  %s3104_s3 = inlined_call_operand.hbm [shape: bf16[128,256], index: 3, kind: input, shape index: {}]   ;;  %s3105_s4 = inlined_call_operand.vmem [shape: f32[1,256], index: 4, kind: input, shape index: {}]   ;;  %s3106_s5 = inlined_call_operand.hbm [shape: bf16[256,384], index: 5, kind: input, shape index: {}]   ;;  %s3107_s6 = inlined_call_operand.vmem [shape: f32[1,128], index: 6, kind: input, shape index: {}]   ;;  %s3108_s7 = inlined_call_operand.hbm [shape: bf16[128,256], index: 7, kind: input, shape index: {}]   ;;  %s3109_s8 = inlined_call_operand.vmem [shape: f32[1,128], index: 8, kind: input, shape index: {}]   ;;  %s3110_s9 = inlined_call_operand.hbm [shape: bf16[128,384], index: 9, kind: output, shape index: {0}]   ;;  %s3111_s10 = inlined_call_operand.hbm [shape: f32[128,128], index: 10, kind: output, shape index: {1}]   ;;  %s3112_s11 = inlined_call_operand.hbm [shape: f32[128,128], index: 11, kind: output, shape index: {2}]  }
   0x1   :  { %18 = vsyncpa [#allocation6], 0 }
   0x2   :  { %19 = vsyncpa [#allocation9], 0 }
   0x3   :  { %20 = vsyncpa [#allocation12], 0 }
   0x4   :  { %21 = vsyncpa [#allocation4], 0 }
   0x5   :  { %22 = vsyncpa [#allocation15], 0  ;;  %s2475_s17 = smov [#allocation5]   ;;  %s2476_s19 = smov [#allocation8]  }
   0x6   :  { %s40_s18 = sshll.u32 %s2475_s17, 4  ;;  %s64_s20 = sshll.u32 %s2476_s19, 4  ;;  %s41_s18 = int_to_ptr.vmem [resolvable:$true] %s40_s18  ;;  %s2549_s20 = int_to_ptr.vmem [resolvable:$true] %s64_s20 }
   0x7   :  { %s2265_s23 = scalar_lea.hbm %s3102_s1, 2048 }
   0x8   :  { %p2266_p0 = scmp.ne.s32.totalorder %s3102_s1, %s2265_s23  ;;  %p2269_p1 = scmp.lt.u32.totalorder %s2265_s23, %s3102_s1 }
   0xa   :  { %p2271_p2 = pnand %p2269_p1, %p2266_p0 }
   0xc   :  { %2274 = shalt.err (!%p2271_p2)
}
   0xd   :  { %s2275_s28 = scalar_lea.vmem %s41_s18, 2048  ;;  %p2280_p4 = scmp.lt.s32.totalorder %s41_s18, %s41_s18 }
   0xe   :  { %p2276_p3 = scmp.ne.s32.totalorder %s41_s18, %s2275_s28  ;;  %p2281_p5 = scmp.lt.s32.totalorder %s2275_s28, %s2275_s28 }
  0x10   :  { %p2282_p6 = por %p2281_p5, %p2280_p4 }
  0x12   :  { %p2283_p7 = pnand %p2282_p6, %p2276_p3 }
  0x14   :  { %2286 = shalt.err (!%p2283_p7)
}
  0x15   :  { %s2477_s29 = smov 128   ;;  %s2478_s30 = smov 8  }
  0x16   :  { %46 = dma.hbm_to_vmem [thread:$0]  %s3102_s1, 2048, %s41_s18, [#allocation6], %s2477_s29, %s2477_s29, %s2478_s30  }
  0x17   :  { %s2287_s16 = scalar_lea.hbm %s3104_s3, 2048 }
  0x18   :  { %p2288_p8 = scmp.ne.s32.totalorder %s3104_s3, %s2287_s16  ;;  %p2291_p9 = scmp.lt.u32.totalorder %s2287_s16, %s3104_s3 }
  0x1a   :  { %p2293_p10 = pnand %p2291_p9, %p2288_p8 }
  0x1c   :  { %2296 = shalt.err (!%p2293_p10)
}
  0x1d   :  { %s2297_s23 = scalar_lea.vmem %s2549_s20, 2048  ;;  %p2302_p12 = scmp.lt.s32.totalorder %s2549_s20, %s2549_s20 }
  0x1e   :  { %p2298_p11 = scmp.ne.s32.totalorder %s2549_s20, %s2297_s23  ;;  %p2303_p13 = scmp.lt.s32.totalorder %s2297_s23, %s2297_s23 }
  0x20   :  { %p2304_p0 = por %p2303_p13, %p2302_p12 }
  0x22   :  { %p2305_p1 = pnand %p2304_p0, %p2298_p11 }
  0x24   :  { %2308 = shalt.err (!%p2305_p1)
}
  0x25   :  { %70 = dma.hbm_to_vmem [thread:$0]  %s3104_s3, 2048, %s2549_s20, [#allocation9], %s2477_s29, %s2477_s29, %s2478_s30  }
  0x26   :  { %s2479_s24 = smov [#allocation2]   ;;  %s2480_s26 = smov [#allocation7]  }
  0x27   :  { %s28_s25 = sshll.u32 %s2479_s24, 4  ;;  %s52_s27 = sshll.u32 %s2480_s26, 4  ;;  %s29_s25 = int_to_ptr.vmem [resolvable:$true] %s28_s25  ;;  %s2586_s27 = int_to_ptr.vmem [resolvable:$true] %s52_s27 }
  0x28   :  { %s2309_s13 = scalar_lea.hbm %s3101_s0, 2048 }
  0x29   :  { %p2310_p2 = scmp.ne.s32.totalorder %s3101_s0, %s2309_s13  ;;  %p2313_p3 = scmp.lt.u32.totalorder %s2309_s13, %s3101_s0 }
  0x2b   :  { %p2315_p4 = pnand %p2313_p3, %p2310_p2 }
  0x2d   :  { %2318 = shalt.err (!%p2315_p4)
}
  0x2e   :  { %s2319_s3 = scalar_lea.vmem %s29_s25, 2048  ;;  %p2324_p6 = scmp.lt.s32.totalorder %s29_s25, %s29_s25 }
  0x2f   :  { %p2320_p5 = scmp.ne.s32.totalorder %s29_s25, %s2319_s3  ;;  %p2325_p7 = scmp.lt.s32.totalorder %s2319_s3, %s2319_s3 }
  0x31   :  { %p2326_p8 = por %p2325_p7, %p2324_p6 }
  0x33   :  { %p2327_p9 = pnand %p2326_p8, %p2320_p5 }
  0x35   :  { %2330 = shalt.err (!%p2327_p9)
}
  0x36   :  { %34 = dma.hbm_to_vmem [thread:$0]  %s3101_s0, 2048, %s29_s25, [#allocation3], %s2477_s29, %s2477_s29, %s2478_s30  }
  0x37   :  { %s2331_s23 = scalar_lea.hbm %s3103_s2, 2048 }
  0x38   :  { %p2332_p10 = scmp.ne.s32.totalorder %s3103_s2, %s2331_s23  ;;  %p2335_p11 = scmp.lt.u32.totalorder %s2331_s23, %s3103_s2 }
  0x3a   :  { %p2337_p12 = pnand %p2335_p11, %p2332_p10 }
  0x3c   :  { %2340 = shalt.err (!%p2337_p12)
}
  0x3d   :  { %s2341_s28 = scalar_lea.vmem %s2586_s27, 2048  ;;  %p2346_p0 = scmp.lt.s32.totalorder %s2586_s27, %s2586_s27 }
  0x3e   :  { %p2342_p13 = scmp.ne.s32.totalorder %s2586_s27, %s2341_s28  ;;  %p2347_p1 = scmp.lt.s32.totalorder %s2341_s28, %s2341_s28 }
  0x40   :  { %p2348_p2 = por %p2347_p1, %p2346_p0 }
  0x42   :  { %p2349_p3 = pnand %p2348_p2, %p2342_p13 }
  0x44   :  { %2352 = shalt.err (!%p2349_p3)
}
  0x45   :  { %58 = dma.hbm_to_vmem [thread:$0]  %s3103_s2, 2048, %s2586_s27, [#allocation6], %s2477_s29, %s2477_s29, %s2478_s30  }
  0x46   :  { %s2481_s12 = smov [#allocation10]   ;;  %s2353_s16 = scalar_lea.hbm %s3106_s5, 6144 }
  0x47   :  { %s78_s13 = sshll.u32 %s2481_s12, 4  ;;  %p2354_p4 = scmp.ne.s32.totalorder %s3106_s5, %s2353_s16  ;;  %s79_s13 = int_to_ptr.vmem [resolvable:$true] %s78_s13 }
  0x48   :  { %p2357_p5 = scmp.lt.u32.totalorder %s2353_s16, %s3106_s5 }
  0x4a   :  { %p2359_p6 = pnand %p2357_p5, %p2354_p4 }
  0x4c   :  { %2362 = shalt.err (!%p2359_p6)
}
  0x4d   :  { %s2363_s21 = scalar_lea.vmem %s79_s13, 6144  ;;  %p2368_p8 = scmp.lt.s32.totalorder %s79_s13, %s79_s13 }
  0x4e   :  { %p2364_p7 = scmp.ne.s32.totalorder %s79_s13, %s2363_s21  ;;  %p2369_p9 = scmp.lt.s32.totalorder %s2363_s21, %s2363_s21 }
  0x50   :  { %p2370_p10 = por %p2369_p9, %p2368_p8 }
  0x52   :  { %p2371_p11 = pnand %p2370_p10, %p2364_p7 }
  0x54   :  { %2374 = shalt.err (!%p2371_p11)
}
  0x55   :  { %s2482_s2 = smov 192   ;;  %s2483_s27 = smov 12  }
  0x56   :  { %84 = dma.hbm_to_vmem [thread:$0]  %s3106_s5, 6144, %s79_s13, [#allocation9], %s2482_s2, %s2482_s2, %s2483_s27  }
  0x57   :  { %s2484_s1 = smov [#allocation11]   ;;  %s2375_s28 = scalar_lea.hbm %s3108_s7, 2048 }
  0x58   :  { %s92_s18 = sshll.u32 %s2484_s1, 4  ;;  %p2376_p12 = scmp.ne.s32.totalorder %s3108_s7, %s2375_s28  ;;  %s93_s18 = int_to_ptr.vmem [resolvable:$true] %s92_s18 }
  0x59   :  { %p2379_p13 = scmp.lt.u32.totalorder %s2375_s28, %s3108_s7 }
  0x5b   :  { %p2381_p0 = pnand %p2379_p13, %p2376_p12 }
  0x5d   :  { %2384 = shalt.err (!%p2381_p0)
}
  0x5e   :  { %s2385_s15 = scalar_lea.vmem %s93_s18, 2048  ;;  %p2390_p2 = scmp.lt.s32.totalorder %s93_s18, %s93_s18 }
  0x5f   :  { %p2386_p1 = scmp.ne.s32.totalorder %s93_s18, %s2385_s15  ;;  %p2391_p3 = scmp.lt.s32.totalorder %s2385_s15, %s2385_s15 }
  0x61   :  { %p2392_p4 = por %p2391_p3, %p2390_p2 }
  0x63   :  { %p2393_p5 = pnand %p2392_p4, %p2386_p1 }
  0x65   :  { %2396 = shalt.err (!%p2393_p5)
}
  0x66   :  { %98 = dma.hbm_to_vmem [thread:$0]  %s3108_s7, 2048, %s93_s18, [#allocation12], %s2477_s29, %s2477_s29, %s2478_s30  }
  0x67   :  { %2463 = dma.done.wait [#allocation3], 2048  }
  0x68   :  { %2464 = vsyncadd [#allocation3], 4294965248 }
  0x69   :  { %2465 = dma.done.wait [#allocation6], 4096  }
  0x6a   :  { %2466 = vsyncadd [#allocation6], 4294963200 }
  0x6b   :  { %2467 = dma.done.wait [#allocation9], 8192  }
  0x6c   :  { %2468 = vsyncadd [#allocation9], 4294959104 }
  0x6d   :  { %2469 = dma.done.wait [#allocation12], 2048  }
  0x6e   :  { %2470 = vsyncadd [#allocation12], 4294965248  ;;  %v2485_v0 = vmov 0   ;;  %v2089_v1 = vld [vmem:[#allocation8 + $0x4] ss:$8 sps:$4 sm:$0xff]   ;;  %v122_v20 = vld [vmem:[#allocation2 + $0x10] sm:$0xff]  ;;  %v162_v60 = vlaneseq }
  0x6f   :  { %284 = vmatprep.mubr.bf16.mxu0 %v2485_v0  ;;  %v2091_v2 = vld [vmem:[#allocation8] ss:$8 sps:$4 sm:$0xff]   ;;  %252 = vmatprep.subr.bf16.mxu0 %v2089_v1  ;;  %v2092_v3 = vld [vmem:[#allocation8 + $0x14] ss:$8 sps:$4 sm:$0xff]   ;;  %v2094_v4 = vld [vmem:[#allocation8 + $0x10] ss:$8 sps:$4 sm:$0xff]  }
  0x70   :  { %253 = vmatpush1.bf16.msra.mxu0 %v2091_v2  ;;  %v2095_v5 = vld [vmem:[#allocation8 + $0x24] ss:$8 sps:$4 sm:$0xff]   ;;  %v2097_v6 = vld [vmem:[#allocation8 + $0x20] ss:$8 sps:$4 sm:$0xff]   ;;  %v2098_v7 = vld [vmem:[#allocation8 + $0x34] ss:$8 sps:$4 sm:$0xff]  }
  0x71   :  { %254 = vmatprep.subr.bf16.mxu0 %v2092_v3  ;;  %v2100_v8 = vld [vmem:[#allocation8 + $0x30] ss:$8 sps:$4 sm:$0xff]   ;;  %v2101_v9 = vld [vmem:[#allocation8 + $0x44] ss:$8 sps:$4 sm:$0xff]   ;;  %v2103_v10 = vld [vmem:[#allocation8 + $0x40] ss:$8 sps:$4 sm:$0xff]  }
  0x72   :  { %v2104_v11 = vld [vmem:[#allocation8 + $0x54] ss:$8 sps:$4 sm:$0xff]   ;;  %v2106_v12 = vld [vmem:[#allocation8 + $0x50] ss:$8 sps:$4 sm:$0xff]   ;;  %v2107_v13 = vld [vmem:[#allocation8 + $0x64] ss:$8 sps:$4 sm:$0xff]  }
  0x73   :  { %v2109_v14 = vld [vmem:[#allocation8 + $0x60] ss:$8 sps:$4 sm:$0xff]   ;;  %v2110_v15 = vld [vmem:[#allocation8 + $0x74] ss:$8 sps:$4 sm:$0xff]   ;;  %v2112_v16 = vld [vmem:[#allocation8 + $0x70] ss:$8 sps:$4 sm:$0xff]  }
  0x74   :  { %255 = vmatpush1.bf16.msra.mxu0 %v2094_v4  ;;  %v120_v17 = vld [vmem:[#allocation2] sm:$0xff]  ;;  %v121_v18 = vld [vmem:[#allocation2 + $0x8] sm:$0xff]  ;;  %v123_v21 = vld [vmem:[#allocation2 + $0x18] sm:$0xff]  ;;  %v163_v63 = vshrl.u32 %v162_v60, 7  ;;  %s2486_s20 = smov [#allocation14]  }
  0x75   :  { %256 = vmatprep.subr.bf16.mxu0 %v2095_v5  ;;  %v152_v19 = vpack.c.bf16 %v121_v18, %v120_v17  ;;  %v153_v22 = vpack.c.bf16 %v123_v21, %v122_v20  ;;  %v124_v23 = vld [vmem:[#allocation2 + $0x20] sm:$0xff]  ;;  %v125_v24 = vld [vmem:[#allocation2 + $0x28] sm:$0xff]  ;;  %v126_v26 = vld [vmem:[#allocation2 + $0x30] sm:$0xff]  ;;  %s1815_s19 = sshll.u32 %s2486_s20, 4  ;;  %s1816_s19 = int_to_ptr.vmem [resolvable:$true] %s1815_s19 }
  0x76   :  { %v154_v25 = vpack.c.bf16 %v125_v24, %v124_v23  ;;  %v127_v27 = vld [vmem:[#allocation2 + $0x38] sm:$0xff]  ;;  %v128_v29 = vld [vmem:[#allocation2 + $0x40] sm:$0xff]  ;;  %v129_v30 = vld [vmem:[#allocation2 + $0x48] sm:$0xff]  ;;  %v164_v3 = vsub.s32 0, %v163_v63  ;;  %p2402_p7 = scmp.lt.s32.totalorder %s1816_s19, %s1816_s19 }
  0x77   :  { %v155_v28 = vpack.c.bf16 %v127_v27, %v126_v26  ;;  %v156_v31 = vpack.c.bf16 %v129_v30, %v128_v29  ;;  %v130_v32 = vld [vmem:[#allocation2 + $0x50] sm:$0xff]  ;;  %v131_v33 = vld [vmem:[#allocation2 + $0x58] sm:$0xff]  ;;  %v132_v35 = vld [vmem:[#allocation2 + $0x60] sm:$0xff] }
  0x78   :  { %257 = vmatpush1.bf16.msra.mxu0 %v2097_v6  ;;  %v157_v34 = vpack.c.bf16 %v131_v33, %v130_v32  ;;  %v133_v36 = vld [vmem:[#allocation2 + $0x68] sm:$0xff]  ;;  %v134_v38 = vld [vmem:[#allocation2 + $0x70] sm:$0xff]  ;;  %v135_v39 = vld [vmem:[#allocation2 + $0x78] sm:$0xff]  ;;  %v168_v6 = vsub.s32 1, %v163_v63 }
  0x79   :  { %258 = vmatprep.subr.bf16.mxu0 %v2098_v7  ;;  %v158_v37 = vpack.c.bf16 %v133_v36, %v132_v35  ;;  %v159_v40 = vpack.c.bf16 %v135_v39, %v134_v38  ;;  %v2113_v41 = vld [vmem:[#allocation10 + $0x4] ss:$12 sps:$4 sm:$0xff]   ;;  %v2115_v42 = vld [vmem:[#allocation10] ss:$12 sps:$4 sm:$0xff]   ;;  %v2116_v43 = vld [vmem:[#allocation10 + $0x1c] ss:$12 sps:$4 sm:$0xff]  }
  0x7a   :  { %973 = vmatprep.subr.bf16.mxu1 %v2113_v41  ;;  %v2118_v44 = vld [vmem:[#allocation10 + $0x18] ss:$12 sps:$4 sm:$0xff]   ;;  %v2119_v45 = vld [vmem:[#allocation10 + $0x34] ss:$12 sps:$4 sm:$0xff]   ;;  %v2121_v46 = vld [vmem:[#allocation10 + $0x30] ss:$12 sps:$4 sm:$0xff]  }
  0x7b   :  { %974 = vmatpush1.bf16.msra.mxu1 %v2115_v42  ;;  %v2122_v47 = vld [vmem:[#allocation10 + $0x4c] ss:$12 sps:$4 sm:$0xff]   ;;  %v2124_v48 = vld [vmem:[#allocation10 + $0x48] ss:$12 sps:$4 sm:$0xff]   ;;  %v2125_v49 = vld [vmem:[#allocation10 + $0x64] ss:$12 sps:$4 sm:$0xff]  }
  0x7c   :  { %259 = vmatpush1.bf16.msra.mxu0 %v2100_v8  ;;  %975 = vmatprep.subr.bf16.mxu1 %v2116_v43  ;;  %v2139_v50 = vld [vmem:[#allocation10 + $0xc8] ss:$12 sps:$4 sm:$0xff]   ;;  %v2145_v52 = vld [vmem:[#allocation10 + $0xe0] ss:$12 sps:$4 sm:$0xff]   ;;  %v2150_v56 = vld [vmem:[#allocation10 + $0xf8] ss:$12 sps:$4 sm:$0xff]  }
  0x7d   :  { %260 = vmatprep.subr.bf16.mxu0 %v2101_v9  ;;  %v2141_v51 = vld [vmem:[#allocation10 + $0x8] ss:$12 sps:$4 sm:$0xff]   ;;  %v2127_v53 = vld [vmem:[#allocation10 + $0x60] ss:$12 sps:$4 sm:$0xff]   ;;  %v2130_v57 = vld [vmem:[#allocation10 + $0x78] ss:$12 sps:$4 sm:$0xff]  }
  0x7e   :  { %v2146_v54 = vld [vmem:[#allocation10 + $0x20] ss:$12 sps:$4 sm:$0xff]   ;;  %v2128_v55 = vld [vmem:[#allocation10 + $0x7c] ss:$12 sps:$4 sm:$0xff]   ;;  %v2151_v58 = vld [vmem:[#allocation10 + $0x38] ss:$12 sps:$4 sm:$0xff]  }
  0x7f   :  { %976 = vmatpush1.bf16.msra.mxu1 %v2118_v44  ;;  %v2131_v59 = vld [vmem:[#allocation10 + $0x94] ss:$12 sps:$4 sm:$0xff]   ;;  %v2133_v61 = vld [vmem:[#allocation10 + $0x90] ss:$12 sps:$4 sm:$0xff]   ;;  %v2134_v62 = vld [vmem:[#allocation10 + $0xac] ss:$12 sps:$4 sm:$0xff]  }
  0x80   :  { %261 = vmatpush1.bf16.msra.mxu0 %v2103_v10  ;;  %977 = vmatprep.subr.bf16.mxu1 %v2119_v45  ;;  %v2136_v1 = vld [vmem:[#allocation10 + $0xa8] ss:$12 sps:$4 sm:$0xff]   ;;  %v2137_v2 = vld [vmem:[#allocation10 + $0xc4] ss:$12 sps:$4 sm:$0xff]   ;;  %v2140_v4 = vld [vmem:[#allocation10 + $0xc0] ss:$12 sps:$4 sm:$0xff]  }
  0x81   :  { %262 = vmatprep.subr.bf16.mxu0 %v2104_v11  ;;  %v160_v5 = vld [vmem:[%s3105_s4] sm:$0x3]  ;;  %v2142_v7 = vld [vmem:[#allocation10 + $0xdc] ss:$12 sps:$4 sm:$0xff]   ;;  %v2144_v9 = vld [vmem:[#allocation10 + $0xd8] ss:$12 sps:$4 sm:$0xff]  }
  0x82   :  { %v2664_v8 = vrot.slane %v160_v5, %v164_v3  ;;  %v2666_v10 = vrot.slane %v160_v5, %v168_v6  ;;  %v2147_v11 = vld [vmem:[#allocation10 + $0xf4] ss:$12 sps:$4 sm:$0xff]  }
  0x83   :  { %978 = vmatpush1.bf16.msra.mxu1 %v2121_v46  ;;  %v2159_v6 = vld [vmem:[#allocation10 + $0x120] ss:$12 sps:$4 sm:$0xff]  }
  0x84   :  { %263 = vmatpush1.bf16.msra.mxu0 %v2106_v12  ;;  %979 = vmatprep.subr.bf16.mxu1 %v2122_v47 }
  0x85   :  { %264 = vmatprep.subr.bf16.mxu0 %v2107_v13 }
  0x87   :  { %980 = vmatpush1.bf16.msra.mxu1 %v2124_v48 }
  0x88   :  { %265 = vmatpush1.bf16.msra.mxu0 %v2109_v14  ;;  %981 = vmatprep.subr.bf16.mxu1 %v2125_v49 }
  0x89   :  { %266 = vmatprep.subr.bf16.mxu0 %v2110_v15  ;;  %v2149_v15 = vld [vmem:[#allocation10 + $0xf0] ss:$12 sps:$4 sm:$0xff]  }
  0x8b   :  { %982 = vmatpush1.bf16.msra.mxu1 %v2127_v53 }
  0x8c   :  { %267 = vmatpush1.bf16.msra.mxu0 %v2112_v16  ;;  %983 = vmatprep.subr.bf16.mxu1 %v2128_v55  ;;  %v2155_v55 = vld [vmem:[#allocation10 + $0x110] ss:$12 sps:$4 sm:$0xff]  }
  0x8d   :  { %1995 = vmatprep.subr.bf16.mxu0 %v2139_v50 }
  0x8f   :  { %285 = vmatmul.mubr.bf16.vlgmr.msra.gmra.mrb[0].mxu0 %v152_v19  ;;  %984 = vmatpush1.bf16.msra.mxu1 %v2130_v57  ;;  %v2156_v57 = vld [vmem:[#allocation10 + $0x50] ss:$12 sps:$4 sm:$0xff]  }
  0x90   :  { %294 = vmatprep.mubr.bf16.mxu0 %v2485_v0  ;;  %1996 = vmatpush3.bf16.msra.mxu0 %v2141_v51 }
  0x91   :  { %1997 = vmatprep.subr.bf16.mxu0 %v2145_v52  ;;  %985 = vmatprep.subr.bf16.mxu1 %v2131_v59 }
  0x93   :  { %986 = vmatpush1.bf16.msra.mxu1 %v2133_v61 }
  0x94   :  { %1998 = vmatpush3.bf16.msra.mxu0 %v2146_v54  ;;  %987 = vmatprep.subr.bf16.mxu1 %v2134_v62  ;;  %v2152_v54 = vld [vmem:[#allocation10 + $0x10c] ss:$12 sps:$4 sm:$0xff]  }
  0x95   :  { %1999 = vmatprep.subr.bf16.mxu0 %v2150_v56  ;;  %v2154_v56 = vld [vmem:[#allocation10 + $0x108] ss:$12 sps:$4 sm:$0xff]  }
  0x97   :  { %295 = vmatmul.mubr.bf16.gmra.mrb[4].mxu0 %v153_v22  ;;  %988 = vmatpush1.bf16.msra.mxu1 %v2136_v1  ;;  %v2157_v1 = vld [vmem:[#allocation10 + $0x124] ss:$12 sps:$4 sm:$0xff]  }
  0x98   :  { %304 = vmatprep.mubr.bf16.mxu0 %v2485_v0  ;;  %2000 = vmatpush3.bf16.msra.mxu0 %v2151_v58 }
  0x99   :  { %989 = vmatprep.subr.bf16.mxu1 %v2137_v2  ;;  %2001 = vmatprep.subr.bf16.mxu0 %v2155_v55  ;;  %v2160_v2 = vld [vmem:[#allocation10 + $0x128] ss:$12 sps:$4 sm:$0xff]  }
  0x9b   :  { %990 = vmatpush1.bf16.msra.mxu1 %v2140_v4 }
  0x9c   :  { %991 = vmatprep.subr.bf16.mxu1 %v2142_v7  ;;  %2002 = vmatpush3.bf16.msra.mxu0 %v2156_v57  ;;  %v2161_v7 = vld [vmem:[#allocation10 + $0x68] ss:$12 sps:$4 sm:$0xff]  }
  0x9d   :  { %2003 = vmatprep.subr.bf16.mxu0 %v2160_v2 }
  0x9f   :  { %305 = vmatmul.mubr.bf16.gmra.mrb[8].mxu0 %v154_v25  ;;  %992 = vmatpush1.bf16.msra.mxu1 %v2144_v9 }
  0xa0   :  { %314 = vmatprep.mubr.bf16.mxu0 %v2485_v0  ;;  %993 = vmatprep.subr.bf16.mxu1 %v2147_v11 }
  0xa1   :  { %2004 = vmatpush3.bf16.msra.mxu0 %v2161_v7 }
  0xa3   :  { %994 = vmatpush1.bf16.msra.mxu1 %v2149_v15 }
  0xa4   :  { %995 = vmatprep.subr.bf16.mxu1 %v2152_v54 }
  0xa7   :  { %315 = vmatmul.mubr.bf16.gmra.mrb[12].mxu0 %v155_v28  ;;  %996 = vmatpush1.bf16.msra.mxu1 %v2154_v56 }
  0xa8   :  { %324 = vmatprep.mubr.bf16.mxu0 %v2485_v0  ;;  %997 = vmatprep.subr.bf16.mxu1 %v2157_v1  ;;  %v2179_v1 = vld [vmem:[#allocation11 + $0x4] ss:$8 sps:$4 sm:$0xff]  }
  0xab   :  { %998 = vmatpush1.bf16.msra.mxu1 %v2159_v6 }
  0xaf   :  { %325 = vmatmul.mubr.bf16.gmra.mrb[16].mxu0 %v156_v31 }
  0xb0   :  { %334 = vmatprep.mubr.bf16.mxu0 %v2485_v0 }
  0xb7   :  { %335 = vmatmul.mubr.bf16.gmra.mrb[20].mxu0 %v157_v34 }
  0xb8   :  { %344 = vmatprep.mubr.bf16.mxu0 %v2485_v0 }
  0xbf   :  { %345 = vmatmul.mubr.bf16.gmra.mrb[24].mxu0 %v158_v37 }
  0xc0   :  { %354 = vmatprep.mubr.bf16.mxu0 %v2485_v0 }
  0xc7   :  { %355 = vmatmul.mubr.bf16.gmra.mrb[28].mxu0 %v159_v40 }
 0x162   :  { %v286_v12 = vpop.f32.mrb[0].mxu0 }
 0x163   :  { %v2669_v13 = vadd.f32 %v286_v12, %v2664_v8  ;;  %v288_v14 = vpop.f32.mrb[1].mxu0 }
 0x164   :  { %v2672_v16 = vadd.f32 %v288_v14, %v2666_v10  ;;  %v290_v17 = vpop.f32.mrb[2].mxu0 }
 0x165   :  { %v2675_v18 = vadd.f32 %v290_v17, %v2664_v8  ;;  %v292_v19 = vpop.f32.mrb[3].mxu0  ;;  %v365_v20 = vmul.f32 %v2669_v13, %v2669_v13  ;;  %v2162_v17 = vld [vmem:[#allocation10 + $0x13c] ss:$12 sps:$4 sm:$0xff]  }
 0x166   :  { %v2680_v21 = vadd.f32 %v292_v19, %v2666_v10  ;;  %v366_v22 = vmul.f32 %v2672_v16, %v2672_v16  ;;  %v2165_v19 = vld [vmem:[#allocation10 + $0x140] ss:$12 sps:$4 sm:$0xff]   ;;  %999 = vmatprep.subr.bf16.mxu1 %v2162_v17 }
 0x167   :  { %v367_v23 = vmul.f32 %v2675_v18, %v2675_v18  ;;  %2005 = vmatprep.subr.bf16.mxu0 %v2165_v19 }
 0x168   :  { %v368_v24 = vmul.f32 %v2680_v21, %v2680_v21  ;;  %v397_v25 = vadd.f32 %v366_v22, %v365_v20  ;;  %v2164_v20 = vld [vmem:[#allocation10 + $0x138] ss:$12 sps:$4 sm:$0xff]   ;;  %v2166_v22 = vld [vmem:[#allocation10 + $0x80] ss:$12 sps:$4 sm:$0xff]  }
 0x169   :  { %1000 = vmatpush1.bf16.msra.mxu1 %v2164_v20  ;;  %2006 = vmatpush3.bf16.msra.mxu0 %v2166_v22 }
 0x16a   :  { %v296_v26 = vpop.f32.mrb[4].mxu0  ;;  %398 = vadd.xlane.f32.xlu0 %v397_v25  ;;  %v400_v31 = vadd.f32 %v368_v24, %v367_v23 }
 0x16b   :  { %v2689_v27 = vadd.f32 %v296_v26, %v2664_v8  ;;  %v298_v28 = vpop.f32.mrb[5].mxu0 }
 0x16c   :  { %v2692_v29 = vadd.f32 %v298_v28, %v2666_v10  ;;  %v300_v30 = vpop.f32.mrb[6].mxu0 }
 0x16d   :  { %v2695_v32 = vadd.f32 %v300_v30, %v2664_v8  ;;  %v302_v33 = vpop.f32.mrb[7].mxu0  ;;  %v369_v34 = vmul.f32 %v2689_v27, %v2689_v27 }
 0x16e   :  { %v2700_v35 = vadd.f32 %v302_v33, %v2666_v10  ;;  %401 = vadd.xlane.f32.xlu0 %v400_v31  ;;  %v370_v36 = vmul.f32 %v2692_v29, %v2692_v29  ;;  %v2167_v31 = vld [vmem:[#allocation10 + $0x154] ss:$12 sps:$4 sm:$0xff]   ;;  %v2170_v33 = vld [vmem:[#allocation10 + $0x158] ss:$12 sps:$4 sm:$0xff]  }
 0x16f   :  { %v371_v37 = vmul.f32 %v2695_v32, %v2695_v32  ;;  %1001 = vmatprep.subr.bf16.mxu1 %v2167_v31  ;;  %2007 = vmatprep.subr.bf16.mxu0 %v2170_v33 }
 0x170   :  { %v372_v38 = vmul.f32 %v2700_v35, %v2700_v35  ;;  %v403_v39 = vadd.f32 %v370_v36, %v369_v34 }
 0x172   :  { %v306_v40 = vpop.f32.mrb[8].mxu0  ;;  %404 = vadd.xlane.f32.xlu1 %v403_v39  ;;  %v406_v45 = vadd.f32 %v372_v38, %v371_v37  ;;  %v2169_v38 = vld [vmem:[#allocation10 + $0x150] ss:$12 sps:$4 sm:$0xff]   ;;  %v2171_v39 = vld [vmem:[#allocation10 + $0x98] ss:$12 sps:$4 sm:$0xff]  }
 0x173   :  { %v2709_v41 = vadd.f32 %v306_v40, %v2664_v8  ;;  %v308_v42 = vpop.f32.mrb[9].mxu0  ;;  %1002 = vmatpush1.bf16.msra.mxu1 %v2169_v38  ;;  %2008 = vmatpush3.bf16.msra.mxu0 %v2171_v39 }
 0x174   :  { %v2712_v43 = vadd.f32 %v308_v42, %v2666_v10  ;;  %v310_v44 = vpop.f32.mrb[10].mxu0 }
 0x175   :  { %v373_v46 = vmul.f32 %v2709_v41, %v2709_v41  ;;  %v2717_v47 = vadd.f32 %v310_v44, %v2664_v8  ;;  %v312_v48 = vpop.f32.mrb[11].mxu0 }
 0x176   :  { %v374_v49 = vmul.f32 %v2712_v43, %v2712_v43  ;;  %v2722_v50 = vadd.f32 %v312_v48, %v2666_v10  ;;  %407 = vadd.xlane.f32.xlu1 %v406_v45  ;;  %v2172_v48 = vld [vmem:[#allocation10 + $0x16c] ss:$12 sps:$4 sm:$0xff]  }
 0x177   :  { %v375_v51 = vmul.f32 %v2717_v47, %v2717_v47  ;;  %1003 = vmatprep.subr.bf16.mxu1 %v2172_v48 }
 0x178   :  { %v376_v52 = vmul.f32 %v2722_v50, %v2722_v50  ;;  %v409_v53 = vadd.f32 %v374_v49, %v373_v46  ;;  %v2175_v49 = vld [vmem:[#allocation10 + $0x170] ss:$12 sps:$4 sm:$0xff]  }
 0x179   :  { %2009 = vmatprep.subr.bf16.mxu0 %v2175_v49 }
 0x17a   :  { %v316_v58 = vpop.f32.mrb[12].mxu0  ;;  %410 = vadd.xlane.f32.xlu0 %v409_v53  ;;  %v412_v59 = vadd.f32 %v376_v52, %v375_v51  ;;  %v2174_v51 = vld [vmem:[#allocation10 + $0x168] ss:$12 sps:$4 sm:$0xff]   ;;  %v2176_v52 = vld [vmem:[#allocation10 + $0xb0] ss:$12 sps:$4 sm:$0xff]  }
 0x17b   :  { %v2729_v60 = vadd.f32 %v316_v58, %v2664_v8  ;;  %v318_v61 = vpop.f32.mrb[13].mxu0  ;;  %1004 = vmatpush1.bf16.msra.mxu1 %v2174_v51  ;;  %2010 = vmatpush3.bf16.msra.mxu0 %v2176_v52 }
 0x17c   :  { %v2732_v62 = vadd.f32 %v318_v61, %v2666_v10  ;;  %v320_v63 = vpop.f32.mrb[14].mxu0  ;;  %413 = vadd.xlane.f32.xlu1 %v412_v59  ;;  %2059 = vmatprep.subr.bf16.mxu1 %v2179_v1 }
 0x17d   :  { %v377_v3 = vmul.f32 %v2729_v60, %v2729_v60  ;;  %v2737_v4 = vadd.f32 %v320_v63, %v2664_v8  ;;  %v322_v5 = vpop.f32.mrb[15].mxu0  ;;  %1287 = vmatprep.subr.bf16.mxu0 %v2179_v1  ;;  %v2838_v1 = vld [vmem:[#allocation5 + $0x38] sm:$0xff] }
 0x17e   :  { %v378_v9 = vmul.f32 %v2732_v62, %v2732_v62  ;;  %v2742_v11 = vadd.f32 %v322_v5, %v2666_v10 }
 0x17f   :  { %v379_v12 = vmul.f32 %v2737_v4, %v2737_v4 }
 0x180   :  { %v380_v14 = vmul.f32 %v2742_v11, %v2742_v11  ;;  %v415_v15 = vadd.f32 %v378_v9, %v377_v3 }
 0x182   :  { %v326_v23 = vpop.f32.mrb[16].mxu0  ;;  %416 = vadd.xlane.f32.xlu0 %v415_v15  ;;  %v418_v24 = vadd.f32 %v380_v14, %v379_v12 }
 0x183   :  { %v2749_v25 = vadd.f32 %v326_v23, %v2664_v8  ;;  %v328_v26 = vpop.f32.mrb[17].mxu0 }
 0x184   :  { %v2752_v28 = vadd.f32 %v328_v26, %v2666_v10  ;;  %v330_v30 = vpop.f32.mrb[18].mxu0  ;;  %419 = vadd.xlane.f32.xlu1 %v418_v24 }
 0x185   :  { %v381_v34 = vmul.f32 %v2749_v25, %v2749_v25  ;;  %v2757_v36 = vadd.f32 %v330_v30, %v2664_v8  ;;  %v332_v37 = vpop.f32.mrb[19].mxu0 }
 0x186   :  { %v382_v40 = vmul.f32 %v2752_v28, %v2752_v28  ;;  %v2762_v42 = vadd.f32 %v332_v37, %v2666_v10 }
 0x187   :  { %v383_v44 = vmul.f32 %v2757_v36, %v2757_v36 }
 0x188   :  { %v384_v45 = vmul.f32 %v2762_v42, %v2762_v42  ;;  %v421_v46 = vadd.f32 %v382_v40, %v381_v34 }
 0x18a   :  { %v336_v53 = vpop.f32.mrb[20].mxu0  ;;  %422 = vadd.xlane.f32.xlu0 %v421_v46  ;;  %v424_v54 = vadd.f32 %v384_v45, %v383_v44 }
 0x18b   :  { %v2769_v55 = vadd.f32 %v336_v53, %v2664_v8  ;;  %v338_v56 = vpop.f32.mrb[21].mxu0  ;;  %v2826_v53 = vld [vmem:[#allocation5 + $0x20] sm:$0xff] }
 0x18c   :  { %v2772_v57 = vadd.f32 %v338_v56, %v2666_v10  ;;  %v340_v58 = vpop.f32.mrb[22].mxu0  ;;  %425 = vadd.xlane.f32.xlu1 %v424_v54 }
 0x18d   :  { %v385_v59 = vmul.f32 %v2769_v55, %v2769_v55  ;;  %v2777_v61 = vadd.f32 %v340_v58, %v2664_v8  ;;  %v342_v63 = vpop.f32.mrb[23].mxu0  ;;  %v2830_v58 = vld [vmem:[#allocation5 + $0x28] sm:$0xff] }
 0x18e   :  { %v386_v2 = vmul.f32 %v2772_v57, %v2772_v57  ;;  %v2782_v3 = vadd.f32 %v342_v63, %v2666_v10  ;;  %v2834_v63 = vld [vmem:[#allocation5 + $0x30] sm:$0xff] }
 0x18f   :  { %v387_v5 = vmul.f32 %v2777_v61, %v2777_v61 }
 0x190   :  { %v388_v6 = vmul.f32 %v2782_v3, %v2782_v3  ;;  %v427_v7 = vadd.f32 %v386_v2, %v385_v59  ;;  %v529_v59 = vmul.f32 %v2826_v53, %v2826_v53  ;;  %v531_v2 = vmul.f32 %v2834_v63, %v2834_v63 }
 0x192   :  { %v346_v9 = vpop.f32.mrb[24].mxu0  ;;  %428 = vadd.xlane.f32.xlu0 %v427_v7  ;;  %v430_v12 = vadd.f32 %v388_v6, %v387_v5  ;;  %v2842_v5 = vld [vmem:[#allocation5 + $0x40] sm:$0xff]  ;;  %v532_v6 = vmul.f32 %v2838_v1, %v2838_v1  ;;  %v2846_v7 = vld [vmem:[#allocation5 + $0x48] sm:$0xff] }
 0x193   :  { %v2789_v14 = vadd.f32 %v346_v9, %v2664_v8  ;;  %v348_v15 = vpop.f32.mrb[25].mxu0  ;;  %v533_v9 = vmul.f32 %v2842_v5, %v2842_v5 }
 0x194   :  { %v2792_v17 = vadd.f32 %v348_v15, %v2666_v10  ;;  %v350_v19 = vpop.f32.mrb[26].mxu0  ;;  %431 = vadd.xlane.f32.xlu1 %v430_v12  ;;  %v2850_v12 = vld [vmem:[#allocation5 + $0x50] sm:$0xff]  ;;  %v534_v15 = vmul.f32 %v2846_v7, %v2846_v7 }
 0x195   :  { %v389_v20 = vmul.f32 %v2789_v14, %v2789_v14  ;;  %v2797_v22 = vadd.f32 %v350_v19, %v2664_v8  ;;  %v352_v23 = vpop.f32.mrb[27].mxu0  ;;  %v2854_v19 = vld [vmem:[#allocation5 + $0x58] sm:$0xff] }
 0x196   :  { %v390_v24 = vmul.f32 %v2792_v17, %v2792_v17  ;;  %v2802_v26 = vadd.f32 %v352_v23, %v2666_v10  ;;  %v2858_v23 = vld [vmem:[#allocation5] sm:$0xff] }
 0x197   :  { %v391_v30 = vmul.f32 %v2797_v22, %v2797_v22 }
 0x198   :  { %v392_v31 = vmul.f32 %v2802_v26, %v2802_v26  ;;  %v433_v33 = vadd.f32 %v390_v24, %v389_v20  ;;  %v535_v20 = vmul.f32 %v2850_v12, %v2850_v12  ;;  %v536_v24 = vmul.f32 %v2854_v19, %v2854_v19 }
 0x19a   :  { %v356_v34 = vpop.f32.mrb[28].mxu0  ;;  %434 = vadd.xlane.f32.xlu0 %v433_v33  ;;  %v436_v37 = vadd.f32 %v392_v31, %v391_v30  ;;  %v2862_v30 = vld [vmem:[#allocation5 + $0x8] sm:$0xff]  ;;  %v525_v31 = vmul.f32 %v2858_v23, %v2858_v23  ;;  %v2866_v33 = vld [vmem:[#allocation5 + $0x60] sm:$0xff] }
 0x19b   :  { %v2809_v38 = vadd.f32 %v356_v34, %v2664_v8  ;;  %v358_v39 = vpop.f32.mrb[29].mxu0  ;;  %v526_v34 = vmul.f32 %v2862_v30, %v2862_v30 }
 0x19c   :  { %v2812_v40 = vadd.f32 %v358_v39, %v2666_v10  ;;  %v360_v44 = vpop.f32.mrb[30].mxu0  ;;  %437 = vadd.xlane.f32.xlu1 %v436_v37  ;;  %v2870_v37 = vld [vmem:[#allocation5 + $0x68] sm:$0xff]  ;;  %v537_v39 = vmul.f32 %v2866_v33, %v2866_v33 }
 0x19d   :  { %v393_v45 = vmul.f32 %v2809_v38, %v2809_v38  ;;  %v2817_v46 = vadd.f32 %v360_v44, %v2664_v8  ;;  %v362_v48 = vpop.f32.mrb[31].mxu0  ;;  %v2874_v44 = vld [vmem:[#allocation5 + $0x10] sm:$0xff] }
 0x19e   :  { %v394_v49 = vmul.f32 %v2812_v40, %v2812_v40  ;;  %v2822_v51 = vadd.f32 %v362_v48, %v2666_v10  ;;  %v530_v10 = vmul.f32 %v2830_v58, %v2830_v58  ;;  %v2878_v48 = vld [vmem:[#allocation5 + $0x18] sm:$0xff] }
 0x19f   :  { %v395_v52 = vmul.f32 %v2817_v46, %v2817_v46 }
 0x1a0   :  { %v396_v54 = vmul.f32 %v2822_v51, %v2822_v51  ;;  %v439_v56 = vadd.f32 %v394_v49, %v393_v45  ;;  %v538_v45 = vmul.f32 %v2870_v37, %v2870_v37  ;;  %v527_v49 = vmul.f32 %v2874_v44, %v2874_v44 }
 0x1a2   :  { %440 = vadd.xlane.f32.xlu0 %v439_v56  ;;  %v442_v8 = vadd.f32 %v396_v54, %v395_v52  ;;  %v2882_v52 = vld [vmem:[#allocation5 + $0x70] sm:$0xff]  ;;  %v528_v54 = vmul.f32 %v2878_v48, %v2878_v48  ;;  %v2886_v56 = vld [vmem:[#allocation5 + $0x78] sm:$0xff] }
 0x1a4   :  { %443 = vadd.xlane.f32.xlu1 %v442_v8  ;;  %v539_v8 = vmul.f32 %v2882_v52, %v2882_v52 }
 0x1a6   :  { %549 = vadd.xlane.f32.xlu0 %v529_v59  ;;  %v540_v59 = vmul.f32 %v2886_v56, %v2886_v56 }
 0x1a8   :  { %551 = vadd.xlane.f32.xlu1 %v530_v10 }
 0x1aa   :  { %553 = vadd.xlane.f32.xlu0 %v531_v2 }
 0x1ac   :  { %555 = vadd.xlane.f32.xlu1 %v532_v6 }
 0x1ae   :  { %557 = vadd.xlane.f32.xlu0 %v533_v9 }
 0x1b0   :  { %559 = vadd.xlane.f32.xlu1 %v534_v15 }
 0x1b2   :  { %561 = vadd.xlane.f32.xlu0 %v535_v20 }
 0x1b4   :  { %563 = vadd.xlane.f32.xlu1 %v536_v24 }
 0x1b6   :  { %541 = vadd.xlane.f32.xlu0 %v525_v31 }
 0x1b8   :  { %543 = vadd.xlane.f32.xlu1 %v526_v34 }
 0x1ba   :  { %565 = vadd.xlane.f32.xlu0 %v537_v39 }
 0x1bc   :  { %567 = vadd.xlane.f32.xlu1 %v538_v45 }
 0x1be   :  { %545 = vadd.xlane.f32.xlu0 %v527_v49 }
 0x1c0   :  { %547 = vadd.xlane.f32.xlu1 %v528_v54 }
 0x1c2   :  { %569 = vadd.xlane.f32.xlu0 %v539_v8 }
 0x1c4   :  { %571 = vadd.xlane.f32.xlu1 %v540_v59 }
 0x1f7   :  { %v399_v10 = vpop.xlane.xlu0 %398 }
 0x1f8   :  { %v445_v2 = vmax.f32 %v399_v10, 1e-24 }
 0x1fa   :  { %2201 = vrsqrt.f32 %v445_v2 }
 0x1fb   :  { %v402_v6 = vpop.xlane.xlu0 %401 }
 0x1fc   :  { %v446_v9 = vmax.f32 %v402_v6, 1e-24 }
 0x1fe   :  { %2203 = vrsqrt.f32 %v446_v9 }
 0x1ff   :  { %v405_v15 = vpop.xlane.xlu1 %404 }
 0x200   :  { %v447_v20 = vmax.f32 %v405_v15, 1e-24  ;;  %v2177_v15 = vld [vmem:[#allocation11] ss:$8 sps:$4 sm:$0xff]  }
 0x202   :  { %2205 = vrsqrt.f32 %v447_v20 }
 0x203   :  { %v408_v24 = vpop.xlane.xlu1 %407 }
 0x204   :  { %v448_v31 = vmax.f32 %v408_v24, 1e-24  ;;  %v2202_v34 = vpop.eup %2201  ;;  %v2182_v24 = vld [vmem:[#allocation11 + $0x14] ss:$8 sps:$4 sm:$0xff]  }
 0x205   :  { %v478_v8 = vmul.f32 %v2202_v34, %v2672_v16  ;;  %v477_v10 = vmul.f32 %v2202_v34, %v2669_v13 }
 0x206   :  { %2207 = vrsqrt.f32 %v448_v31 }
 0x207   :  { %v411_v39 = vpop.xlane.xlu0 %410 }
 0x208   :  { %v2204_v45 = vpop.eup %2203  ;;  %v449_v49 = vmax.f32 %v411_v39, 1e-24  ;;  %v2180_v39 = vld [vmem:[#allocation11 + $0x10] ss:$8 sps:$4 sm:$0xff]  }
 0x209   :  { %v414_v54 = vpop.xlane.xlu1 %413  ;;  %v480_v59 = vmul.f32 %v2204_v45, %v2680_v21  ;;  %v479_v2 = vmul.f32 %v2204_v45, %v2675_v18  ;;  %v2185_v18 = vld [vmem:[#allocation11 + $0x24] ss:$8 sps:$4 sm:$0xff]  }
 0x20a   :  { %2209 = vrsqrt.f32 %v449_v49  ;;  %v450_v6 = vmax.f32 %v414_v54, 1e-24 }
 0x20b   :  { %v702_v9 = vpack.c.bf16 %v480_v59, %v478_v8  ;;  %v701_v20 = vpack.c.bf16 %v479_v2, %v477_v10 }
 0x20c   :  { %2211 = vrsqrt.f32 %v450_v6  ;;  %v2206_v31 = vpop.eup %2205  ;;  %v2183_v6 = vld [vmem:[#allocation11 + $0x20] ss:$8 sps:$4 sm:$0xff]  }
 0x20d   :  { %1005 = vmatprep.mubr.bf16.mxu1 %v702_v9  ;;  %1118 = vmatprep.mubr.bf16.mxu0 %v702_v9  ;;  %v482_v45 = vmul.f32 %v2206_v31, %v2692_v29  ;;  %v481_v54 = vmul.f32 %v2206_v31, %v2689_v27  ;;  %v2186_v31 = vld [vmem:[#allocation11 + $0x30] ss:$8 sps:$4 sm:$0xff]  }
 0x20e   :  { %1006 = vmatmul.mubr.bf16.vlgmr.msra.gmra.mrb[0].mxu1 %v701_v20  ;;  %1119 = vmatmul.mubr.bf16.vlgmr.msra.gmra.mrb[32].mxu0 %v701_v20 }
 0x20f   :  { %2067 = vmatpush1.bf16.msra.mxu1 %v2177_v15  ;;  %v417_v16 = vpop.xlane.xlu0 %416  ;;  %1288 = vmatpush1.bf16.msra.mxu0 %v2177_v15  ;;  %v2188_v15 = vld [vmem:[#allocation11 + $0x34] ss:$8 sps:$4 sm:$0xff]  }
 0x210   :  { %v2208_v21 = vpop.eup %2207  ;;  %v451_v13 = vmax.f32 %v417_v16, 1e-24  ;;  %2060 = vmatprep.subr.bf16.mxu1 %v2182_v24  ;;  %1289 = vmatprep.subr.bf16.mxu0 %v2182_v24 }
 0x211   :  { %v420_v34 = vpop.xlane.xlu1 %419  ;;  %v484_v49 = vmul.f32 %v2208_v21, %v2700_v35  ;;  %v483_v8 = vmul.f32 %v2208_v21, %v2695_v32  ;;  %v2191_v21 = vld [vmem:[#allocation11 + $0x44] ss:$8 sps:$4 sm:$0xff]  }
 0x212   :  { %2213 = vrsqrt.f32 %v451_v13  ;;  %v452_v59 = vmax.f32 %v420_v34, 1e-24  ;;  %v2189_v34 = vld [vmem:[#allocation11 + $0x40] ss:$8 sps:$4 sm:$0xff]  }
 0x213   :  { %v704_v10 = vpack.c.bf16 %v484_v49, %v482_v45  ;;  %v703_v2 = vpack.c.bf16 %v483_v8, %v481_v54  ;;  %2068 = vmatpush1.bf16.msra.mxu1 %v2180_v39  ;;  %1290 = vmatpush1.bf16.msra.mxu0 %v2180_v39 }
 0x214   :  { %v2210_v9 = vpop.eup %2209  ;;  %2215 = vrsqrt.f32 %v452_v59  ;;  %2061 = vmatprep.subr.bf16.mxu1 %v2185_v18  ;;  %1291 = vmatprep.subr.bf16.mxu0 %v2185_v18 }
 0x215   :  { %1015 = vmatprep.mubr.bf16.mxu1 %v704_v10  ;;  %1126 = vmatprep.mubr.bf16.mxu0 %v704_v10  ;;  %v486_v32 = vmul.f32 %v2210_v9, %v2712_v43  ;;  %v485_v18 = vmul.f32 %v2210_v9, %v2709_v41  ;;  %v2192_v10 = vld [vmem:[#allocation11 + $0x50] ss:$8 sps:$4 sm:$0xff]   ;;  %v2197_v9 = vld [vmem:[#allocation11 + $0x64] ss:$8 sps:$4 sm:$0xff]  }
 0x216   :  { %v2212_v29 = vpop.eup %2211  ;;  %1016 = vmatmul.mubr.bf16.gmra.mrb[4].mxu1 %v703_v2  ;;  %1127 = vmatmul.mubr.bf16.gmra.mrb[36].mxu0 %v703_v2 }
 0x217   :  { %v423_v27 = vpop.xlane.xlu0 %422  ;;  %v488_v35 = vmul.f32 %v2212_v29, %v2722_v50  ;;  %2069 = vmatpush1.bf16.msra.mxu1 %v2183_v6  ;;  %1292 = vmatpush1.bf16.msra.mxu0 %v2183_v6  ;;  %v487_v24 = vmul.f32 %v2212_v29, %v2717_v47  ;;  %v2194_v47 = vld [vmem:[#allocation11 + $0x54] ss:$8 sps:$4 sm:$0xff]  }
 0x218   :  { %v453_v20 = vmax.f32 %v423_v27, 1e-24  ;;  %2062 = vmatprep.subr.bf16.mxu1 %v2188_v15  ;;  %1293 = vmatprep.subr.bf16.mxu0 %v2188_v15  ;;  %v2195_v27 = vld [vmem:[#allocation11 + $0x60] ss:$8 sps:$4 sm:$0xff]  }
 0x219   :  { %v426_v16 = vpop.xlane.xlu1 %425  ;;  %v706_v39 = vpack.c.bf16 %v488_v35, %v486_v32  ;;  %v705_v50 = vpack.c.bf16 %v487_v24, %v485_v18 }
 0x21a   :  { %2217 = vrsqrt.f32 %v453_v20  ;;  %v454_v13 = vmax.f32 %v426_v16, 1e-24  ;;  %v2198_v16 = vld [vmem:[#allocation11 + $0x70] ss:$8 sps:$4 sm:$0xff]  }
 0x21b   :  { %1025 = vmatprep.mubr.bf16.mxu1 %v706_v39  ;;  %1134 = vmatprep.mubr.bf16.mxu0 %v706_v39 }
 0x21c   :  { %v2214_v43 = vpop.eup %2213  ;;  %2219 = vrsqrt.f32 %v454_v13  ;;  %2070 = vmatpush1.bf16.msra.mxu1 %v2186_v31  ;;  %1294 = vmatpush1.bf16.msra.mxu0 %v2186_v31 }
 0x21d   :  { %2063 = vmatprep.subr.bf16.mxu1 %v2191_v21  ;;  %1295 = vmatprep.subr.bf16.mxu0 %v2191_v21  ;;  %v490_v54 = vmul.f32 %v2214_v43, %v2732_v62  ;;  %v489_v29 = vmul.f32 %v2214_v43, %v2729_v60 }
 0x21e   :  { %v2216_v45 = vpop.eup %2215  ;;  %1026 = vmatmul.mubr.bf16.gmra.mrb[8].mxu1 %v705_v50  ;;  %1135 = vmatmul.mubr.bf16.gmra.mrb[40].mxu0 %v705_v50 }
 0x21f   :  { %v429_v49 = vpop.xlane.xlu0 %428  ;;  %v492_v8 = vmul.f32 %v2216_v45, %v2742_v11  ;;  %v491_v59 = vmul.f32 %v2216_v45, %v2737_v4  ;;  %v2200_v4 = vld [vmem:[#allocation11 + $0x74] ss:$8 sps:$4 sm:$0xff]  }
 0x220   :  { %v455_v41 = vmax.f32 %v429_v49, 1e-24  ;;  %2071 = vmatpush1.bf16.msra.mxu1 %v2189_v34  ;;  %1296 = vmatpush1.bf16.msra.mxu0 %v2189_v34 }
 0x221   :  { %v432_v2 = vpop.xlane.xlu1 %431  ;;  %v708_v6 = vpack.c.bf16 %v492_v8, %v490_v54  ;;  %2064 = vmatprep.subr.bf16.mxu1 %v2194_v47  ;;  %1297 = vmatprep.subr.bf16.mxu0 %v2194_v47  ;;  %v707_v11 = vpack.c.bf16 %v491_v59, %v489_v29 }
 0x222   :  { %2221 = vrsqrt.f32 %v455_v41  ;;  %v456_v15 = vmax.f32 %v432_v2, 1e-24 }
 0x223   :  { %1035 = vmatprep.mubr.bf16.mxu1 %v708_v6  ;;  %1142 = vmatprep.mubr.bf16.mxu0 %v708_v6 }
 0x224   :  { %v2218_v62 = vpop.eup %2217  ;;  %2223 = vrsqrt.f32 %v456_v15  ;;  %2072 = vmatpush1.bf16.msra.mxu1 %v2192_v10  ;;  %1298 = vmatpush1.bf16.msra.mxu0 %v2192_v10 }
 0x225   :  { %2065 = vmatprep.subr.bf16.mxu1 %v2197_v9  ;;  %1299 = vmatprep.subr.bf16.mxu0 %v2197_v9  ;;  %v494_v20 = vmul.f32 %v2218_v62, %v2752_v28  ;;  %v493_v18 = vmul.f32 %v2218_v62, %v2749_v25 }
 0x226   :  { %v2220_v32 = vpop.eup %2219  ;;  %1036 = vmatmul.mubr.bf16.gmra.mrb[12].mxu1 %v707_v11  ;;  %1143 = vmatmul.mubr.bf16.gmra.mrb[44].mxu0 %v707_v11 }
 0x227   :  { %v435_v35 = vpop.xlane.xlu0 %434  ;;  %v496_v24 = vmul.f32 %v2220_v32, %v2762_v42  ;;  %v495_v31 = vmul.f32 %v2220_v32, %v2757_v36 }
 0x228   :  { %v457_v60 = vmax.f32 %v435_v35, 1e-24  ;;  %2073 = vmatpush1.bf16.msra.mxu1 %v2195_v27  ;;  %1300 = vmatpush1.bf16.msra.mxu0 %v2195_v27 }
 0x229   :  { %v438_v39 = vpop.xlane.xlu1 %437  ;;  %v710_v21 = vpack.c.bf16 %v496_v24, %v494_v20  ;;  %2066 = vmatprep.subr.bf16.mxu1 %v2200_v4  ;;  %1301 = vmatprep.subr.bf16.mxu0 %v2200_v4  ;;  %v709_v28 = vpack.c.bf16 %v495_v31, %v493_v18 }
 0x22a   :  { %2225 = vrsqrt.f32 %v457_v60  ;;  %v458_v13 = vmax.f32 %v438_v39, 1e-24 }
 0x22b   :  { %1045 = vmatprep.mubr.bf16.mxu1 %v710_v21  ;;  %1150 = vmatprep.mubr.bf16.mxu0 %v710_v21 }
 0x22c   :  { %v2222_v43 = vpop.eup %2221  ;;  %2227 = vrsqrt.f32 %v458_v13  ;;  %2074 = vmatpush1.bf16.msra.mxu1 %v2198_v16  ;;  %1302 = vmatpush1.bf16.msra.mxu0 %v2198_v16 }
 0x22d   :  { %v498_v50 = vmul.f32 %v2222_v43, %v2772_v57  ;;  %v497_v8 = vmul.f32 %v2222_v43, %v2769_v55 }
 0x22e   :  { %v2224_v42 = vpop.eup %2223  ;;  %1046 = vmatmul.mubr.bf16.gmra.mrb[16].mxu1 %v709_v28  ;;  %1151 = vmatmul.mubr.bf16.gmra.mrb[48].mxu0 %v709_v28 }
 0x22f   :  { %v441_v36 = vpop.xlane.xlu0 %440  ;;  %v500_v34 = vmul.f32 %v2224_v42, %v2782_v3  ;;  %v499_v45 = vmul.f32 %v2224_v42, %v2777_v61 }
 0x230   :  { %v459_v47 = vmax.f32 %v441_v36, 1e-24 }
 0x231   :  { %v444_v49 = vpop.xlane.xlu1 %443  ;;  %v712_v25 = vpack.c.bf16 %v500_v34, %v498_v50  ;;  %v711_v10 = vpack.c.bf16 %v499_v45, %v497_v8 }
 0x232   :  { %2229 = vrsqrt.f32 %v459_v47  ;;  %v460_v54 = vmax.f32 %v444_v49, 1e-24 }
 0x233   :  { %1055 = vmatprep.mubr.bf16.mxu1 %v712_v25  ;;  %1158 = vmatprep.mubr.bf16.mxu0 %v712_v25  ;;  %v550_v41 = vpop.xlane.xlu0 %549 }
 0x234   :  { %v2226_v59 = vpop.eup %2225  ;;  %2231 = vrsqrt.f32 %v460_v54  ;;  %v577_v2 = vmax.f32 %v550_v41, 1e-24 }
 0x235   :  { %v552_v6 = vpop.xlane.xlu1 %551  ;;  %v502_v61 = vmul.f32 %v2226_v59, %v2792_v17  ;;  %v501_v11 = vmul.f32 %v2226_v59, %v2789_v14 }
 0x236   :  { %v2228_v57 = vpop.eup %2227  ;;  %1056 = vmatmul.mubr.bf16.gmra.mrb[20].mxu1 %v711_v10  ;;  %1159 = vmatmul.mubr.bf16.gmra.mrb[52].mxu0 %v711_v10  ;;  %v578_v3 = vmax.f32 %v552_v6, 1e-24  ;;  %2233 = vrsqrt.f32 %v577_v2 }
 0x237   :  { %v504_v9 = vmul.f32 %v2228_v57, %v2802_v26  ;;  %v554_v15 = vpop.xlane.xlu0 %553  ;;  %v503_v55 = vmul.f32 %v2228_v57, %v2797_v22 }
 0x238   :  { %2235 = vrsqrt.f32 %v578_v3  ;;  %v579_v35 = vmax.f32 %v554_v15, 1e-24 }
 0x239   :  { %v714_v29 = vpack.c.bf16 %v504_v9, %v502_v61  ;;  %v556_v62 = vpop.xlane.xlu1 %555  ;;  %v713_v32 = vpack.c.bf16 %v503_v55, %v501_v11 }
 0x23a   :  { %v580_v20 = vmax.f32 %v556_v62, 1e-24  ;;  %2237 = vrsqrt.f32 %v579_v35 }
 0x23b   :  { %1065 = vmatprep.mubr.bf16.mxu1 %v714_v29  ;;  %1166 = vmatprep.mubr.bf16.mxu0 %v714_v29  ;;  %v558_v27 = vpop.xlane.xlu0 %557 }
 0x23c   :  { %v2230_v4 = vpop.eup %2229  ;;  %2239 = vrsqrt.f32 %v580_v20  ;;  %v581_v18 = vmax.f32 %v558_v27, 1e-24 }
 0x23d   :  { %v560_v24 = vpop.xlane.xlu1 %559  ;;  %v506_v26 = vmul.f32 %v2230_v4, %v2812_v40  ;;  %v505_v21 = vmul.f32 %v2230_v4, %v2809_v38 }
 0x23e   :  { %v2232_v17 = vpop.eup %2231  ;;  %1066 = vmatmul.mubr.bf16.gmra.mrb[24].mxu1 %v713_v32  ;;  %1167 = vmatmul.mubr.bf16.gmra.mrb[56].mxu0 %v713_v32  ;;  %v582_v40 = vmax.f32 %v560_v24, 1e-24 }
 0x23f   :  { %v508_v22 = vmul.f32 %v2232_v17, %v2822_v51  ;;  %v562_v60 = vpop.xlane.xlu0 %561  ;;  %v507_v31 = vmul.f32 %v2232_v17, %v2817_v46 }
 0x240   :  { %v2234_v39 = vpop.eup %2233  ;;  %v583_v25 = vmax.f32 %v562_v60, 1e-24 }
 0x241   :  { %v716_v14 = vpack.c.bf16 %v508_v22, %v506_v26  ;;  %v564_v16 = vpop.xlane.xlu1 %563  ;;  %v715_v28 = vpack.c.bf16 %v507_v31, %v505_v21  ;;  %v609_v50 = vmul.f32 %v2234_v39, %v2826_v53 }
 0x242   :  { %v2236_v13 = vpop.eup %2235  ;;  %v584_v53 = vmax.f32 %v564_v16, 1e-24 }
 0x243   :  { %1075 = vmatprep.mubr.bf16.mxu1 %v716_v14  ;;  %1174 = vmatprep.mubr.bf16.mxu0 %v716_v14  ;;  %v542_v43 = vpop.xlane.xlu0 %541  ;;  %v610_v51 = vmul.f32 %v2236_v13, %v2830_v58 }
 0x244   :  { %v573_v42 = vmax.f32 %v542_v43, 1e-24  ;;  %v2238_v47 = vpop.eup %2237 }
 0x245   :  { %v544_v36 = vpop.xlane.xlu1 %543  ;;  %v1201_v45 = vpack.c.bf16 %v610_v51, %v609_v50  ;;  %v611_v41 = vmul.f32 %v2238_v47, %v2834_v63  ;;  %v2955_v47 = vld [vmem:[#allocation7] sm:$0xff] }
 0x246   :  { %1076 = vmatmul.mubr.bf16.gmra.mrb[28].mxu1 %v715_v28  ;;  %1175 = vmatmul.mubr.bf16.gmra.mrb[60].mxu0 %v715_v28  ;;  %v574_v46 = vmax.f32 %v544_v36, 1e-24  ;;  %2241 = vrsqrt.f32 %v573_v42  ;;  %v2240_v49 = vpop.eup %2239 }
 0x247   :  { %2243 = vrsqrt.f32 %v581_v18  ;;  %1339 = vmatprep.mubr.bf16.mxu1 %v2485_v0  ;;  %v566_v38 = vpop.xlane.xlu0 %565  ;;  %1319 = vmatprep.mubr.bf16.mxu0 %v2485_v0  ;;  %v612_v59 = vmul.f32 %v2240_v49, %v2838_v1 }
 0x248   :  { %2245 = vrsqrt.f32 %v574_v46  ;;  %v585_v55 = vmax.f32 %v566_v38, 1e-24 }
 0x249   :  { %2247 = vrsqrt.f32 %v582_v40  ;;  %v568_v34 = vpop.xlane.xlu1 %567  ;;  %v1202_v61 = vpack.c.bf16 %v612_v59, %v611_v41 }
 0x24a   :  { %v586_v63 = vmax.f32 %v568_v34, 1e-24 }
 0x24b   :  { %v546_v58 = vpop.xlane.xlu0 %545 }
 0x24c   :  { %v575_v54 = vmax.f32 %v546_v58, 1e-24 }
 0x24d   :  { %v548_v8 = vpop.xlane.xlu1 %547 }
 0x24e   :  { %1340 = vmatmul.mubr.bf16.vlgmr.msra.gmra.mrb[32].mxu1 %v1201_v45  ;;  %v576_v10 = vmax.f32 %v548_v8, 1e-24  ;;  %2249 = vrsqrt.f32 %v575_v54  ;;  %v2957_v54 = vld [vmem:[#allocation7 + $0x8] sm:$0xff] }
 0x24f   :  { %2251 = vrsqrt.f32 %v583_v25  ;;  %1349 = vmatprep.mubr.bf16.mxu1 %v2485_v0  ;;  %v570_v27 = vpop.xlane.xlu0 %569 }
 0x250   :  { %v2242_v2 = vpop.eup %2241  ;;  %2253 = vrsqrt.f32 %v576_v10  ;;  %v587_v24 = vmax.f32 %v570_v27, 1e-24 }
 0x251   :  { %v2244_v6 = vpop.eup %2243  ;;  %2255 = vrsqrt.f32 %v584_v53  ;;  %v605_v57 = vmul.f32 %v2242_v2, %v2858_v23  ;;  %v572_v35 = vpop.xlane.xlu1 %571 }
 0x252   :  { %v2246_v3 = vpop.eup %2245  ;;  %v613_v1 = vmul.f32 %v2244_v6, %v2842_v5  ;;  %2257 = vrsqrt.f32 %v585_v55 }
 0x253   :  { %v2248_v9 = vpop.eup %2247  ;;  %v606_v15 = vmul.f32 %v2246_v3, %v2862_v30  ;;  %2259 = vrsqrt.f32 %v586_v63 }
 0x254   :  { %v614_v62 = vmul.f32 %v2248_v9, %v2846_v7  ;;  %v588_v7 = vmax.f32 %v572_v35, 1e-24  ;;  %2261 = vrsqrt.f32 %v587_v24 }
 0x255   :  { %v1199_v29 = vpack.c.bf16 %v606_v15, %v605_v57 }
 0x256   :  { %1350 = vmatmul.mubr.bf16.gmra.mrb[36].mxu1 %v1202_v61  ;;  %v1203_v32 = vpack.c.bf16 %v614_v62, %v613_v1  ;;  %2263 = vrsqrt.f32 %v588_v7  ;;  %v2963_v62 = vld [vmem:[#allocation7 + $0x10] sm:$0xff] }
 0x257   :  { %1359 = vmatprep.mubr.bf16.mxu1 %v2485_v0  ;;  %1320 = vmatmul.mubr.bf16.vlgmr.msra.gmra.mrb[64].mxu0 %v1199_v29 }
 0x258   :  { %v2250_v11 = vpop.eup %2249  ;;  %1329 = vmatprep.mubr.bf16.mxu0 %v2485_v0 }
 0x259   :  { %v2252_v23 = vpop.eup %2251  ;;  %v607_v30 = vmul.f32 %v2250_v11, %v2874_v44 }
 0x25a   :  { %v2254_v4 = vpop.eup %2253  ;;  %v615_v26 = vmul.f32 %v2252_v23, %v2850_v12 }
 0x25b   :  { %v2256_v20 = vpop.eup %2255  ;;  %v608_v5 = vmul.f32 %v2254_v4, %v2878_v48  ;;  %v2965_v4 = vld [vmem:[#allocation7 + $0x18] sm:$0xff] }
 0x25c   :  { %v616_v22 = vmul.f32 %v2256_v20, %v2854_v19  ;;  %v2258_v44 = vpop.eup %2257 }
 0x25d   :  { %v1200_v17 = vpack.c.bf16 %v608_v5, %v607_v30  ;;  %v2260_v31 = vpop.eup %2259  ;;  %v617_v14 = vmul.f32 %v2258_v44, %v2866_v33 }
 0x25e   :  { %1360 = vmatmul.mubr.bf16.gmra.mrb[40].mxu1 %v1203_v32  ;;  %v1204_v60 = vpack.c.bf16 %v616_v22, %v615_v26  ;;  %v618_v48 = vmul.f32 %v2260_v31, %v2870_v37  ;;  %v2262_v16 = vpop.eup %2261  ;;  %v2951_v37 = vld [vmem:[%s3107_s6] ss:$0 sm:$0xff] }
 0x25f   :  { %1369 = vmatprep.mubr.bf16.mxu1 %v2485_v0  ;;  %1330 = vmatmul.mubr.bf16.gmra.mrb[68].mxu0 %v1200_v17  ;;  %v619_v19 = vmul.f32 %v2262_v16, %v2882_v52 }
 0x260   :  { %v1205_v39 = vpack.c.bf16 %v618_v48, %v617_v14  ;;  %v2264_v12 = vpop.eup %2263 }
 0x261   :  { %v620_v21 = vmul.f32 %v2264_v12, %v2886_v56  ;;  %v2971_v12 = vld [vmem:[#allocation7 + $0x20] sm:$0xff] }
 0x263   :  { %v1206_v13 = vpack.c.bf16 %v620_v21, %v619_v19 }
 0x266   :  { %1370 = vmatmul.mubr.bf16.gmra.mrb[44].mxu1 %v1204_v60 }
 0x267   :  { %1379 = vmatprep.mubr.bf16.mxu1 %v2485_v0 }
 0x26e   :  { %1380 = vmatmul.mubr.bf16.gmra.mrb[48].mxu1 %v1205_v39 }
 0x26f   :  { %1389 = vmatprep.mubr.bf16.mxu1 %v2485_v0 }
 0x276   :  { %1390 = vmatmul.mubr.bf16.gmra.mrb[52].mxu1 %v1206_v13 }
 0x2e1   :  { %v1007_v18 = vpop.f32.mrb[0].mxu1  ;;  %v2011_v43 = vpop.f32.mrb[32].mxu0 }
 0x2e2   :  { %v1009_v28 = vpop.f32.mrb[1].mxu1  ;;  %v2012_v33 = vpop.f32.mrb[33].mxu0 }
 0x2e3   :  { %v1963_v42 = vpack.c.bf16 %v1009_v28, %v1007_v18  ;;  %v2013_v40 = vadd.f32 %v2012_v33, %v2011_v43  ;;  %v1011_v36 = vpop.f32.mrb[2].mxu1  ;;  %v2014_v51 = vpop.f32.mrb[34].mxu0  ;;  %v2973_v43 = vld [vmem:[#allocation7 + $0x28] sm:$0xff] }
 0x2e4   :  { %v1013_v52 = vpop.f32.mrb[3].mxu1  ;;  %v2015_v50 = vpop.f32.mrb[35].mxu0 }
 0x2e5   :  { %1496 = vst [vmem:[#allocation13] sm:$0xff] %v1963_v42  ;;  %v1599_v0 = vadd.f32 %v2013_v40, %v2951_v37  ;;  %v1964_v56 = vpack.c.bf16 %v1013_v52, %v1011_v36  ;;  %v2016_v46 = vadd.f32 %v2015_v50, %v2014_v51 }
 0x2e7   :  { %vm1615_vm0 = vcmp.ge.f32.partialorder %v1599_v0, 0.0  ;;  %v1631_v38 = vmul.f32 0.01, %v1599_v0  ;;  %1497 = vst [vmem:[#allocation13 + $0xc] sm:$0xff] %v1964_v56  ;;  %v1600_v34 = vadd.f32 %v2016_v46, %v2951_v37 }
 0x2e9   :  { %v1647_v45 = vsel %vm1615_vm0, %v1599_v0, %v1631_v38  ;;  %vm1616_vm1 = vcmp.ge.f32.partialorder %v1600_v34, 0.0  ;;  %v1632_v49 = vmul.f32 0.01, %v1600_v34  ;;  %v1017_v25 = vpop.f32.mrb[4].mxu1  ;;  %v2017_v58 = vpop.f32.mrb[36].mxu0 }
 0x2ea   :  { %v1019_v53 = vpop.f32.mrb[5].mxu1  ;;  %v2018_v8 = vpop.f32.mrb[37].mxu0  ;;  %v1663_v41 = vadd.f32 %v1647_v45, %v2955_v47 }
 0x2eb   :  { %v1648_v59 = vsel %vm1616_vm1, %v1600_v34, %v1632_v49  ;;  %v1965_v10 = vpack.c.bf16 %v1019_v53, %v1017_v25  ;;  %v2019_v2 = vadd.f32 %v2018_v8, %v2017_v58  ;;  %v1021_v6 = vpop.f32.mrb[6].mxu1  ;;  %v2020_v57 = vpop.f32.mrb[38].mxu0  ;;  %v2979_v58 = vld [vmem:[#allocation7 + $0x30] sm:$0xff] }
 0x2ec   :  { %v1023_v3 = vpop.f32.mrb[7].mxu1  ;;  %v2021_v61 = vpop.f32.mrb[39].mxu0  ;;  %1679 = vst [vmem:[#allocation14] sm:$0xff] %v1663_v41  ;;  %v1664_v9 = vadd.f32 %v1648_v59, %v2957_v54 }
 0x2ed   :  { %1498 = vst [vmem:[#allocation13 + $0x18] sm:$0xff] %v1965_v10  ;;  %v1601_v15 = vadd.f32 %v2019_v2, %v2951_v37  ;;  %v1966_v55 = vpack.c.bf16 %v1023_v3, %v1021_v6  ;;  %v2022_v63 = vadd.f32 %v2021_v61, %v2020_v57  ;;  %v2981_v10 = vld [vmem:[#allocation7 + $0x38] sm:$0xff] }
 0x2ee   :  { %1680 = vst [vmem:[#allocation14 + $0x8] sm:$0xff] %v1664_v9 }
 0x2ef   :  { %vm1617_vm2 = vcmp.ge.f32.partialorder %v1601_v15, 0.0  ;;  %v1633_v29 = vmul.f32 0.01, %v1601_v15  ;;  %1499 = vst [vmem:[#allocation13 + $0x24] sm:$0xff] %v1966_v55  ;;  %v1602_v1 = vadd.f32 %v2022_v63, %v2951_v37 }
 0x2f1   :  { %v1649_v11 = vsel %vm1617_vm2, %v1601_v15, %v1633_v29  ;;  %vm1618_vm3 = vcmp.ge.f32.partialorder %v1602_v1, 0.0  ;;  %v1634_v23 = vmul.f32 0.01, %v1602_v1  ;;  %v1027_v27 = vpop.f32.mrb[8].mxu1  ;;  %v2023_v30 = vpop.f32.mrb[40].mxu0 }
 0x2f2   :  { %v1029_v32 = vpop.f32.mrb[9].mxu1  ;;  %v2024_v35 = vpop.f32.mrb[41].mxu0  ;;  %v1665_v20 = vadd.f32 %v1649_v11, %v2963_v62 }
 0x2f3   :  { %v1650_v5 = vsel %vm1618_vm3, %v1602_v1, %v1634_v23  ;;  %v1967_v24 = vpack.c.bf16 %v1029_v32, %v1027_v27  ;;  %v2025_v7 = vadd.f32 %v2024_v35, %v2023_v30  ;;  %v1031_v17 = vpop.f32.mrb[10].mxu1  ;;  %v2026_v26 = vpop.f32.mrb[42].mxu0  ;;  %v2987_v35 = vld [vmem:[#allocation7 + $0x40] sm:$0xff] }
 0x2f4   :  { %v1033_v22 = vpop.f32.mrb[11].mxu1  ;;  %v2027_v44 = vpop.f32.mrb[43].mxu0  ;;  %1681 = vst [vmem:[#allocation14 + $0x10] sm:$0xff] %v1665_v20  ;;  %v1666_v60 = vadd.f32 %v1650_v5, %v2965_v4 }
 0x2f5   :  { %1500 = vst [vmem:[#allocation13 + $0x30] sm:$0xff] %v1967_v24  ;;  %v1603_v31 = vadd.f32 %v2025_v7, %v2951_v37  ;;  %v1968_v14 = vpack.c.bf16 %v1033_v22, %v1031_v17  ;;  %v2028_v48 = vadd.f32 %v2027_v44, %v2026_v26  ;;  %v2989_v17 = vld [vmem:[#allocation7 + $0x48] sm:$0xff] }
 0x2f6   :  { %1682 = vst [vmem:[#allocation14 + $0x18] sm:$0xff] %v1666_v60 }
 0x2f7   :  { %vm1619_vm4 = vcmp.ge.f32.partialorder %v1603_v31, 0.0  ;;  %v1635_v16 = vmul.f32 0.01, %v1603_v31  ;;  %1501 = vst [vmem:[#allocation13 + $0x3c] sm:$0xff] %v1968_v14  ;;  %v1604_v39 = vadd.f32 %v2028_v48, %v2951_v37 }
 0x2f9   :  { %v1651_v19 = vsel %vm1619_vm4, %v1603_v31, %v1635_v16  ;;  %vm1620_vm5 = vcmp.ge.f32.partialorder %v1604_v39, 0.0  ;;  %v1636_v21 = vmul.f32 0.01, %v1604_v39  ;;  %v1037_v13 = vpop.f32.mrb[12].mxu1  ;;  %v2029_v18 = vpop.f32.mrb[44].mxu0 }
 0x2fa   :  { %v1039_v28 = vpop.f32.mrb[13].mxu1  ;;  %v2030_v33 = vpop.f32.mrb[45].mxu0  ;;  %v1667_v42 = vadd.f32 %v1651_v19, %v2971_v12 }
 0x2fb   :  { %v1652_v40 = vsel %vm1620_vm5, %v1604_v39, %v1636_v21  ;;  %v1969_v36 = vpack.c.bf16 %v1039_v28, %v1037_v13  ;;  %v2031_v51 = vadd.f32 %v2030_v33, %v2029_v18  ;;  %v1041_v52 = vpop.f32.mrb[14].mxu1  ;;  %v2032_v50 = vpop.f32.mrb[46].mxu0 }
 0x2fc   :  { %v1043_v0 = vpop.f32.mrb[15].mxu1  ;;  %v2033_v56 = vpop.f32.mrb[47].mxu0  ;;  %1683 = vst [vmem:[#allocation14 + $0x20] sm:$0xff] %v1667_v42  ;;  %v1668_v46 = vadd.f32 %v1652_v40, %v2973_v43  ;;  %v2995_v40 = vld [vmem:[#allocation7 + $0x50] sm:$0xff] }
 0x2fd   :  { %1502 = vst [vmem:[#allocation13 + $0x48] sm:$0xff] %v1969_v36  ;;  %v1605_v38 = vadd.f32 %v2031_v51, %v2951_v37  ;;  %v1970_v34 = vpack.c.bf16 %v1043_v0, %v1041_v52  ;;  %v2034_v45 = vadd.f32 %v2033_v56, %v2032_v50  ;;  %v2997_v0 = vld [vmem:[#allocation7 + $0x58] sm:$0xff] }
 0x2fe   :  { %1684 = vst [vmem:[#allocation14 + $0x28] sm:$0xff] %v1668_v46 }
 0x2ff   :  { %vm1621_vm6 = vcmp.ge.f32.partialorder %v1605_v38, 0.0  ;;  %v1637_v49 = vmul.f32 0.01, %v1605_v38  ;;  %1503 = vst [vmem:[#allocation13 + $0x54] sm:$0xff] %v1970_v34  ;;  %v1606_v25 = vadd.f32 %v2034_v45, %v2951_v37 }
 0x301   :  { %v1653_v53 = vsel %vm1621_vm6, %v1605_v38, %v1637_v49  ;;  %vm1622_vm7 = vcmp.ge.f32.partialorder %v1606_v25, 0.0  ;;  %v1638_v8 = vmul.f32 0.01, %v1606_v25  ;;  %v1047_v41 = vpop.f32.mrb[16].mxu1  ;;  %v2035_v59 = vpop.f32.mrb[48].mxu0 }
 0x302   :  { %v1049_v2 = vpop.f32.mrb[17].mxu1  ;;  %v2036_v6 = vpop.f32.mrb[49].mxu0  ;;  %v1669_v57 = vadd.f32 %v1653_v53, %v2979_v58 }
 0x303   :  { %v1654_v3 = vsel %vm1622_vm7, %v1606_v25, %v1638_v8  ;;  %v1971_v61 = vpack.c.bf16 %v1049_v2, %v1047_v41  ;;  %v2037_v9 = vadd.f32 %v2036_v6, %v2035_v59  ;;  %v1051_v15 = vpop.f32.mrb[18].mxu1  ;;  %v2038_v55 = vpop.f32.mrb[50].mxu0 }
 0x304   :  { %v1053_v63 = vpop.f32.mrb[19].mxu1  ;;  %v2039_v29 = vpop.f32.mrb[51].mxu0  ;;  %1685 = vst [vmem:[#allocation14 + $0x30] sm:$0xff] %v1669_v57  ;;  %v1670_v1 = vadd.f32 %v1654_v3, %v2981_v10 }
 0x305   :  { %1504 = vst [vmem:[#allocation13 + $0x60] sm:$0xff] %v1971_v61  ;;  %v1607_v11 = vadd.f32 %v2037_v9, %v2951_v37  ;;  %v1972_v23 = vpack.c.bf16 %v1053_v63, %v1051_v15  ;;  %v2040_v27 = vadd.f32 %v2039_v29, %v2038_v55  ;;  %v3003_v9 = vld [vmem:[#allocation7 + $0x60] sm:$0xff] }
 0x306   :  { %1686 = vst [vmem:[#allocation14 + $0x38] sm:$0xff] %v1670_v1  ;;  %v3005_v1 = vld [vmem:[#allocation7 + $0x68] sm:$0xff] }
 0x307   :  { %vm1623_vm8 = vcmp.ge.f32.partialorder %v1607_v11, 0.0  ;;  %v1639_v30 = vmul.f32 0.01, %v1607_v11  ;;  %1505 = vst [vmem:[#allocation13 + $0x6c] sm:$0xff] %v1972_v23  ;;  %v1608_v32 = vadd.f32 %v2040_v27, %v2951_v37 }
 0x309   :  { %v1655_v20 = vsel %vm1623_vm8, %v1607_v11, %v1639_v30  ;;  %vm1624_vm9 = vcmp.ge.f32.partialorder %v1608_v32, 0.0  ;;  %v1640_v5 = vmul.f32 0.01, %v1608_v32  ;;  %v1057_v24 = vpop.f32.mrb[20].mxu1  ;;  %v2041_v7 = vpop.f32.mrb[52].mxu0 }
 0x30a   :  { %v1059_v26 = vpop.f32.mrb[21].mxu1  ;;  %v2042_v22 = vpop.f32.mrb[53].mxu0  ;;  %v1671_v44 = vadd.f32 %v1655_v20, %v2987_v35 }
 0x30b   :  { %v1656_v60 = vsel %vm1624_vm9, %v1608_v32, %v1640_v5  ;;  %v1973_v31 = vpack.c.bf16 %v1059_v26, %v1057_v24  ;;  %v2043_v14 = vadd.f32 %v2042_v22, %v2041_v7  ;;  %v1061_v48 = vpop.f32.mrb[22].mxu1  ;;  %v2044_v16 = vpop.f32.mrb[54].mxu0 }
 0x30c   :  { %v1063_v39 = vpop.f32.mrb[23].mxu1  ;;  %v2045_v19 = vpop.f32.mrb[55].mxu0  ;;  %1687 = vst [vmem:[#allocation14 + $0x40] sm:$0xff] %v1671_v44  ;;  %v1672_v21 = vadd.f32 %v1656_v60, %v2989_v17 }
 0x30d   :  { %1506 = vst [vmem:[#allocation13 + $0x78] sm:$0xff] %v1973_v31  ;;  %v1609_v13 = vadd.f32 %v2043_v14, %v2951_v37  ;;  %v1974_v18 = vpack.c.bf16 %v1063_v39, %v1061_v48  ;;  %v2046_v28 = vadd.f32 %v2045_v19, %v2044_v16  ;;  %v3011_v16 = vld [vmem:[#allocation7 + $0x70] sm:$0xff]  ;;  %v3016_v39 = vld [vmem:[%s3109_s8] ss:$0 sm:$0xff]  ;;  %s2397_s8 = scalar_lea.vmem %s1816_s19, 2048 }
 0x30e   :  { %1688 = vst [vmem:[#allocation14 + $0x48] sm:$0xff] %v1672_v21  ;;  %p2398_p6 = scmp.ne.s32.totalorder %s1816_s19, %s2397_s8  ;;  %p2403_p8 = scmp.lt.s32.totalorder %s2397_s8, %s2397_s8 }
 0x30f   :  { %vm1625_vm10 = vcmp.ge.f32.partialorder %v1609_v13, 0.0  ;;  %v1641_v33 = vmul.f32 0.01, %v1609_v13  ;;  %1507 = vst [vmem:[#allocation13 + $0x84] sm:$0xff] %v1974_v18  ;;  %v1610_v42 = vadd.f32 %v2046_v28, %v2951_v37  ;;  %v3018_v18 = vld [vmem:[#allocation7 + $0x78] sm:$0xff] }
 0x310   :  { %p2404_p9 = por %p2403_p8, %p2402_p7 }
 0x311   :  { %v1657_v36 = vsel %vm1625_vm10, %v1609_v13, %v1641_v33  ;;  %vm1626_vm11 = vcmp.ge.f32.partialorder %v1610_v42, 0.0  ;;  %v1642_v51 = vmul.f32 0.01, %v1610_v42  ;;  %v1067_v52 = vpop.f32.mrb[24].mxu1  ;;  %v2047_v50 = vpop.f32.mrb[56].mxu0 }
 0x312   :  { %v1069_v56 = vpop.f32.mrb[25].mxu1  ;;  %v2048_v46 = vpop.f32.mrb[57].mxu0  ;;  %v1673_v38 = vadd.f32 %v1657_v36, %v2995_v40  ;;  %p2405_p10 = pnand %p2404_p9, %p2398_p6 }
 0x313   :  { %v1658_v34 = vsel %vm1626_vm11, %v1610_v42, %v1642_v51  ;;  %v1975_v45 = vpack.c.bf16 %v1069_v56, %v1067_v52  ;;  %v2049_v49 = vadd.f32 %v2048_v46, %v2047_v50  ;;  %v1071_v25 = vpop.f32.mrb[26].mxu1  ;;  %v2050_v53 = vpop.f32.mrb[58].mxu0 }
 0x314   :  { %v1073_v8 = vpop.f32.mrb[27].mxu1  ;;  %v2051_v41 = vpop.f32.mrb[59].mxu0  ;;  %1689 = vst [vmem:[#allocation14 + $0x50] sm:$0xff] %v1673_v38  ;;  %v1674_v59 = vadd.f32 %v1658_v34, %v2997_v0 }
 0x315   :  { %1508 = vst [vmem:[#allocation13 + $0x90] sm:$0xff] %v1975_v45  ;;  %v1611_v2 = vadd.f32 %v2049_v49, %v2951_v37  ;;  %v1976_v6 = vpack.c.bf16 %v1073_v8, %v1071_v25  ;;  %v2052_v57 = vadd.f32 %v2051_v41, %v2050_v53 }
 0x316   :  { %1690 = vst [vmem:[#allocation14 + $0x58] sm:$0xff] %v1674_v59 }
 0x317   :  { %vm1627_vm12 = vcmp.ge.f32.partialorder %v1611_v2, 0.0  ;;  %v1643_v3 = vmul.f32 0.01, %v1611_v2  ;;  %1509 = vst [vmem:[#allocation13 + $0x9c] sm:$0xff] %v1976_v6  ;;  %v1612_v61 = vadd.f32 %v2052_v57, %v2951_v37 }
 0x319   :  { %v1659_v15 = vsel %vm1627_vm12, %v1611_v2, %v1643_v3  ;;  %vm1628_vm13 = vcmp.ge.f32.partialorder %v1612_v61, 0.0  ;;  %v1644_v55 = vmul.f32 0.01, %v1612_v61  ;;  %v1077_v63 = vpop.f32.mrb[28].mxu1  ;;  %v2053_v29 = vpop.f32.mrb[60].mxu0 }
 0x31a   :  { %v1079_v11 = vpop.f32.mrb[29].mxu1  ;;  %v2054_v23 = vpop.f32.mrb[61].mxu0  ;;  %v1675_v27 = vadd.f32 %v1659_v15, %v3003_v9 }
 0x31b   :  { %v1660_v30 = vsel %vm1628_vm13, %v1612_v61, %v1644_v55  ;;  %v1977_v32 = vpack.c.bf16 %v1079_v11, %v1077_v63  ;;  %v2055_v20 = vadd.f32 %v2054_v23, %v2053_v29  ;;  %v1081_v5 = vpop.f32.mrb[30].mxu1  ;;  %v2056_v24 = vpop.f32.mrb[62].mxu0 }
 0x31c   :  { %v1083_v7 = vpop.f32.mrb[31].mxu1  ;;  %v2057_v26 = vpop.f32.mrb[63].mxu0  ;;  %1691 = vst [vmem:[#allocation14 + $0x60] sm:$0xff] %v1675_v27  ;;  %v1676_v22 = vadd.f32 %v1660_v30, %v3005_v1 }
 0x31d   :  { %1510 = vst [vmem:[#allocation13 + $0xa8] sm:$0xff] %v1977_v32  ;;  %v1613_v44 = vadd.f32 %v2055_v20, %v2951_v37  ;;  %v1978_v60 = vpack.c.bf16 %v1083_v7, %v1081_v5  ;;  %v2058_v31 = vadd.f32 %v2057_v26, %v2056_v24 }
 0x31e   :  { %1692 = vst [vmem:[#allocation14 + $0x68] sm:$0xff] %v1676_v22 }
 0x31f   :  { %vm1629_vm14 = vcmp.ge.f32.partialorder %v1613_v44, 0.0  ;;  %v1645_v14 = vmul.f32 0.01, %v1613_v44  ;;  %1511 = vst [vmem:[#allocation13 + $0xb4] sm:$0xff] %v1978_v60  ;;  %v1614_v48 = vadd.f32 %v2058_v31, %v2951_v37 }
 0x321   :  { %v1661_v19 = vsel %vm1629_vm14, %v1613_v44, %v1645_v14  ;;  %vm1630_vm15 = vcmp.ge.f32.partialorder %v1614_v48, 0.0  ;;  %v1646_v21 = vmul.f32 0.01, %v1614_v48  ;;  %v1341_v13 = vpop.f32.mrb[32].mxu1 }
 0x322   :  { %v1983_v28 = vpack.c.bf16 %v1341_v13, %v1341_v13  ;;  %v1343_v33 = vpop.f32.mrb[33].mxu1  ;;  %v1677_v42 = vadd.f32 %v1661_v19, %v3011_v16 }
 0x323   :  { %v1662_v37 = vsel %vm1630_vm15, %v1614_v48, %v1646_v21  ;;  %v1706_v36 = vadd.f32 %v3016_v39, %v1343_v33  ;;  %v1345_v51 = vpop.f32.mrb[34].mxu1 }
 0x324   :  { %1580 = vst [vmem:[#allocation13 + $0x38] sm:$0xf] %v1983_v28  ;;  %v1984_v52 = vpack.c.bf16 %v1345_v51, %v1345_v51  ;;  %v1347_v50 = vpop.f32.mrb[35].mxu1  ;;  %1693 = vst [vmem:[#allocation14 + $0x70] sm:$0xff] %v1677_v42  ;;  %v1678_v56 = vadd.f32 %v1662_v37, %v3018_v18 }
 0x325   :  { %vm1722_vm0 = vcmp.ge.f32.partialorder %v1706_v36, 0.0  ;;  %v1738_v46 = vmul.f32 0.01, %v1706_v36  ;;  %v1707_v38 = vadd.f32 %v3016_v39, %v1347_v50 }
 0x326   :  { %1581 = vst [vmem:[#allocation13 + $0x44] sm:$0xf] %v1984_v52  ;;  %1694 = vst [vmem:[#allocation14 + $0x78] sm:$0xff] %v1678_v56 }
 0x327   :  { %v1754_v34 = vsel %vm1722_vm0, %v1706_v36, %v1738_v46  ;;  %vm1723_vm1 = vcmp.ge.f32.partialorder %v1707_v38, 0.0  ;;  %v1739_v45 = vmul.f32 0.01, %v1707_v38 }
 0x328   :  { %2408 = shalt.err (!%p2405_p10)
}
 0x329   :  { %s2409_s23 = scalar_lea.hbm %s3111_s10, 2048 }
 0x32a   :  { %p2410_p11 = scmp.ne.s32.totalorder %s3111_s10, %s2409_s23  ;;  %p2413_p12 = scmp.lt.u32.totalorder %s2409_s23, %s3111_s10 }
 0x32c   :  { %p2415_p13 = pnand %p2413_p12, %p2410_p11 }
 0x32e   :  { %2418 = shalt.err (!%p2415_p13)
}
 0x32f   :  { %1821 = dma.vmem_to_hbm [thread:$0]  %s1816_s19, 2048, %s3111_s10, [#allocation15], %s2477_s29, %s2477_s29, %s2478_s30   ;;  %v1770_v49 = vadd.f32 %v1754_v34, %v2971_v12  ;;  %v1755_v25 = vsel %vm1723_vm1, %v1707_v38, %v1739_v45  ;;  %v1351_v53 = vpop.f32.mrb[36].mxu1  ;;  %v1321_v2 = vpop.f32.mrb[64].mxu0 }
 0x330   :  { %v1771_v8 = vadd.f32 %v1755_v25, %v2973_v43  ;;  %v1985_v41 = vpack.c.bf16 %v1351_v53, %v1351_v53  ;;  %v1353_v59 = vpop.f32.mrb[37].mxu1  ;;  %v1979_v3 = vpack.c.bf16 %v1321_v2, %v1321_v2  ;;  %v1323_v61 = vpop.f32.mrb[65].mxu0  ;;  %s2487_s10 = smov [#allocation13]   ;;  %s2488_s12 = smov [#allocation16]  }
 0x331   :  { %1786 = vst [vmem:[#allocation16 + $0x20] sm:$0xff] %v1770_v49  ;;  %v1708_v6 = vadd.f32 %v3016_v39, %v1353_v59  ;;  %v1355_v57 = vpop.f32.mrb[38].mxu1  ;;  %v1702_v12 = vadd.f32 %v3016_v39, %v1323_v61  ;;  %v1325_v63 = vpop.f32.mrb[66].mxu0  ;;  %s1803_s25 = sshll.u32 %s2487_s10, 4  ;;  %s1827_s14 = sshll.u32 %s2488_s12, 4  ;;  %s1804_s25 = int_to_ptr.vmem [resolvable:$true] %s1803_s25  ;;  %s1828_s14 = int_to_ptr.vmem [resolvable:$true] %s1827_s14 }
 0x332   :  { %1787 = vst [vmem:[#allocation16 + $0x28] sm:$0xff] %v1771_v8  ;;  %1582 = vst [vmem:[#allocation13 + $0x50] sm:$0xf] %v1985_v41  ;;  %v1986_v15 = vpack.c.bf16 %v1355_v57, %v1355_v57  ;;  %v1357_v55 = vpop.f32.mrb[39].mxu1  ;;  %v1980_v43 = vpack.c.bf16 %v1325_v63, %v1325_v63  ;;  %v1327_v23 = vpop.f32.mrb[67].mxu0  ;;  %s2419_s15 = scalar_lea.vmem %s1804_s25, 3072  ;;  %p2424_p1 = scmp.lt.s32.totalorder %s1804_s25, %s1804_s25 }
 0x333   :  { %vm1724_vm2 = vcmp.ge.f32.partialorder %v1708_v6, 0.0  ;;  %v1740_v29 = vmul.f32 0.01, %v1708_v6  ;;  %v1709_v11 = vadd.f32 %v3016_v39, %v1357_v55  ;;  %1576 = vst [vmem:[#allocation13 + $0x8] sm:$0xf] %v1979_v3  ;;  %vm1718_vm3 = vcmp.ge.f32.partialorder %v1702_v12, 0.0  ;;  %p2420_p0 = scmp.ne.s32.totalorder %s1804_s25, %s2419_s15  ;;  %p2425_p2 = scmp.lt.s32.totalorder %s2419_s15, %s2419_s15 }
 0x334   :  { %1583 = vst [vmem:[#allocation13 + $0x5c] sm:$0xf] %v1986_v15  ;;  %v1734_v27 = vmul.f32 0.01, %v1702_v12  ;;  %v1703_v30 = vadd.f32 %v3016_v39, %v1327_v23  ;;  %1577 = vst [vmem:[#allocation13 + $0x14] sm:$0xf] %v1980_v43 }
 0x335   :  { %v1756_v32 = vsel %vm1724_vm2, %v1708_v6, %v1740_v29  ;;  %vm1725_vm4 = vcmp.ge.f32.partialorder %v1709_v11, 0.0  ;;  %v1741_v20 = vmul.f32 0.01, %v1709_v11  ;;  %v1361_v22 = vpop.f32.mrb[40].mxu1  ;;  %v1331_v19 = vpop.f32.mrb[68].mxu0  ;;  %p2426_p3 = por %p2425_p2, %p2424_p1 }
 0x336   :  { %v1772_v5 = vadd.f32 %v1756_v32, %v2979_v58  ;;  %v1750_v24 = vsel %vm1718_vm3, %v1702_v12, %v1734_v27  ;;  %vm1719_vm5 = vcmp.ge.f32.partialorder %v1703_v30, 0.0  ;;  %v1735_v7 = vmul.f32 0.01, %v1703_v30  ;;  %v1363_v14 = vpop.f32.mrb[41].mxu1  ;;  %v1333_v33 = vpop.f32.mrb[69].mxu0 }
 0x337   :  { %v1757_v26 = vsel %vm1725_vm4, %v1709_v11, %v1741_v20  ;;  %v1766_v44 = vadd.f32 %v1750_v24, %v2955_v47  ;;  %v1987_v31 = vpack.c.bf16 %v1361_v22, %v1361_v22  ;;  %v1710_v21 = vadd.f32 %v3016_v39, %v1363_v14  ;;  %v1365_v13 = vpop.f32.mrb[42].mxu1  ;;  %v1335_v36 = vpop.f32.mrb[70].mxu0  ;;  %p2427_p4 = pnand %p2426_p3, %p2420_p0 }
 0x338   :  { %1788 = vst [vmem:[#allocation16 + $0x30] sm:$0xff] %v1772_v5  ;;  %v1773_v60 = vadd.f32 %v1757_v26, %v2981_v10  ;;  %v1751_v48 = vsel %vm1719_vm5, %v1703_v30, %v1735_v7  ;;  %v1981_v28 = vpack.c.bf16 %v1331_v19, %v1331_v19  ;;  %v1988_v42 = vpack.c.bf16 %v1365_v13, %v1365_v13  ;;  %v1367_v37 = vpop.f32.mrb[43].mxu1  ;;  %v1337_v50 = vpop.f32.mrb[71].mxu0 }
 0x339   :  { %1782 = vst [vmem:[#allocation16] sm:$0xff] %v1766_v44  ;;  %v1767_v58 = vadd.f32 %v1751_v48, %v2957_v54  ;;  %1584 = vst [vmem:[#allocation13 + $0x68] sm:$0xf] %v1987_v31  ;;  %v1704_v47 = vadd.f32 %v3016_v39, %v1333_v33  ;;  %vm1726_vm6 = vcmp.ge.f32.partialorder %v1710_v21, 0.0  ;;  %v1742_v10 = vmul.f32 0.01, %v1710_v21 }
 0x33a   :  { %1789 = vst [vmem:[#allocation16 + $0x38] sm:$0xff] %v1773_v60  ;;  %v1711_v51 = vadd.f32 %v3016_v39, %v1367_v37  ;;  %1578 = vst [vmem:[#allocation13 + $0x20] sm:$0xf] %v1981_v28  ;;  %v1982_v52 = vpack.c.bf16 %v1335_v36, %v1335_v36  ;;  %v1705_v56 = vadd.f32 %v3016_v39, %v1337_v50  ;;  %v1371_v53 = vpop.f32.mrb[44].mxu1 }
 0x33b   :  { %1783 = vst [vmem:[#allocation16 + $0x8] sm:$0xff] %v1767_v58  ;;  %1585 = vst [vmem:[#allocation13 + $0x74] sm:$0xf] %v1988_v42  ;;  %vm1720_vm7 = vcmp.ge.f32.partialorder %v1704_v47, 0.0  ;;  %v1736_v54 = vmul.f32 0.01, %v1704_v47  ;;  %v1758_v46 = vsel %vm1726_vm6, %v1710_v21, %v1742_v10  ;;  %v1989_v59 = vpack.c.bf16 %v1371_v53, %v1371_v53 }
 0x33c   :  { %vm1727_vm8 = vcmp.ge.f32.partialorder %v1711_v51, 0.0  ;;  %v1743_v38 = vmul.f32 0.01, %v1711_v51  ;;  %1579 = vst [vmem:[#allocation13 + $0x2c] sm:$0xf] %v1982_v52  ;;  %v1774_v34 = vadd.f32 %v1758_v46, %v2987_v35  ;;  %vm1721_vm9 = vcmp.ge.f32.partialorder %v1705_v56, 0.0 }
 0x33d   :  { %v1752_v45 = vsel %vm1720_vm7, %v1704_v47, %v1736_v54  ;;  %v1737_v49 = vmul.f32 0.01, %v1705_v56  ;;  %v1373_v2 = vpop.f32.mrb[45].mxu1  ;;  %1586 = vst [vmem:[#allocation13 + $0x80] sm:$0xf] %v1989_v59 }
 0x33e   :  { %v1759_v25 = vsel %vm1727_vm8, %v1711_v51, %v1743_v38  ;;  %v1768_v8 = vadd.f32 %v1752_v45, %v2963_v62  ;;  %1790 = vst [vmem:[#allocation16 + $0x40] sm:$0xff] %v1774_v34  ;;  %v1712_v57 = vadd.f32 %v3016_v39, %v1373_v2  ;;  %v1375_v3 = vpop.f32.mrb[46].mxu1 }
 0x33f   :  { %v1775_v41 = vadd.f32 %v1759_v25, %v2989_v17  ;;  %v1753_v6 = vsel %vm1721_vm9, %v1705_v56, %v1737_v49  ;;  %v1990_v35 = vpack.c.bf16 %v1375_v3, %v1375_v3  ;;  %v1377_v15 = vpop.f32.mrb[47].mxu1 }
 0x340   :  { %1784 = vst [vmem:[#allocation16 + $0x10] sm:$0xff] %v1768_v8  ;;  %v1769_v61 = vadd.f32 %v1753_v6, %v2965_v4  ;;  %vm1728_vm10 = vcmp.ge.f32.partialorder %v1712_v57, 0.0  ;;  %v1744_v55 = vmul.f32 0.01, %v1712_v57  ;;  %v1713_v62 = vadd.f32 %v3016_v39, %v1377_v15 }
 0x341   :  { %1791 = vst [vmem:[#allocation16 + $0x48] sm:$0xff] %v1775_v41  ;;  %1587 = vst [vmem:[#allocation13 + $0x8c] sm:$0xf] %v1990_v35  ;;  %v1381_v11 = vpop.f32.mrb[48].mxu1 }
 0x342   :  { %1785 = vst [vmem:[#allocation16 + $0x18] sm:$0xff] %v1769_v61  ;;  %v1760_v17 = vsel %vm1728_vm10, %v1712_v57, %v1744_v55  ;;  %vm1729_vm11 = vcmp.ge.f32.partialorder %v1713_v62, 0.0  ;;  %v1745_v12 = vmul.f32 0.01, %v1713_v62  ;;  %v1991_v43 = vpack.c.bf16 %v1381_v11, %v1381_v11  ;;  %v1383_v23 = vpop.f32.mrb[49].mxu1 }
 0x343   :  { %v1776_v63 = vadd.f32 %v1760_v17, %v2995_v40  ;;  %v1714_v27 = vadd.f32 %v3016_v39, %v1383_v23  ;;  %v1385_v30 = vpop.f32.mrb[50].mxu1 }
 0x344   :  { %v1761_v29 = vsel %vm1729_vm11, %v1713_v62, %v1745_v12  ;;  %1588 = vst [vmem:[#allocation13 + $0x98] sm:$0xf] %v1991_v43  ;;  %v1992_v32 = vpack.c.bf16 %v1385_v30, %v1385_v30  ;;  %v1387_v20 = vpop.f32.mrb[51].mxu1 }
 0x345   :  { %1792 = vst [vmem:[#allocation16 + $0x50] sm:$0xff] %v1776_v63  ;;  %v1777_v4 = vadd.f32 %v1761_v29, %v2997_v0  ;;  %vm1730_vm12 = vcmp.ge.f32.partialorder %v1714_v27, 0.0  ;;  %v1746_v5 = vmul.f32 0.01, %v1714_v27  ;;  %v1715_v24 = vadd.f32 %v3016_v39, %v1387_v20 }
 0x346   :  { %1589 = vst [vmem:[#allocation13 + $0xa4] sm:$0xf] %v1992_v32 }
 0x347   :  { %1793 = vst [vmem:[#allocation16 + $0x58] sm:$0xff] %v1777_v4  ;;  %v1762_v40 = vsel %vm1730_vm12, %v1714_v27, %v1746_v5  ;;  %vm1731_vm13 = vcmp.ge.f32.partialorder %v1715_v24, 0.0  ;;  %v1747_v7 = vmul.f32 0.01, %v1715_v24 }
 0x348   :  { %v1778_v26 = vadd.f32 %v1762_v40, %v3003_v9 }
 0x349   :  { %v1763_v0 = vsel %vm1731_vm13, %v1715_v24, %v1747_v7  ;;  %v1391_v22 = vpop.f32.mrb[52].mxu1 }
 0x34a   :  { %1794 = vst [vmem:[#allocation16 + $0x60] sm:$0xff] %v1778_v26  ;;  %v1779_v44 = vadd.f32 %v1763_v0, %v3005_v1  ;;  %v1993_v60 = vpack.c.bf16 %v1391_v22, %v1391_v22  ;;  %v1393_v31 = vpop.f32.mrb[53].mxu1 }
 0x34b   :  { %v1716_v14 = vadd.f32 %v3016_v39, %v1393_v31  ;;  %v1395_v48 = vpop.f32.mrb[54].mxu1 }
 0x34c   :  { %1795 = vst [vmem:[#allocation16 + $0x68] sm:$0xff] %v1779_v44  ;;  %1590 = vst [vmem:[#allocation13 + $0xb0] sm:$0xf] %v1993_v60  ;;  %v1994_v19 = vpack.c.bf16 %v1395_v48, %v1395_v48  ;;  %v1397_v21 = vpop.f32.mrb[55].mxu1 }
 0x34d   :  { %vm1732_vm14 = vcmp.ge.f32.partialorder %v1716_v14, 0.0  ;;  %v1748_v13 = vmul.f32 0.01, %v1716_v14  ;;  %v1717_v9 = vadd.f32 %v3016_v39, %v1397_v21 }
 0x34e   :  { %1591 = vst [vmem:[#allocation13 + $0xbc] sm:$0xf] %v1994_v19 }
 0x34f   :  { %v1764_v58 = vsel %vm1732_vm14, %v1716_v14, %v1748_v13  ;;  %vm1733_vm15 = vcmp.ge.f32.partialorder %v1717_v9, 0.0  ;;  %v1749_v1 = vmul.f32 0.01, %v1717_v9 }
 0x350   :  { %2430 = shalt.err (!%p2427_p4)
}
 0x351   :  { %s2431_s7 = scalar_lea.hbm %s3110_s9, 3072 }
 0x352   :  { %p2432_p5 = scmp.ne.s32.totalorder %s3110_s9, %s2431_s7  ;;  %p2435_p6 = scmp.lt.u32.totalorder %s2431_s7, %s3110_s9 }
 0x354   :  { %p2437_p7 = pnand %p2435_p6, %p2432_p5 }
 0x356   :  { %2440 = shalt.err (!%p2437_p7)
}
 0x357   :  { %1809 = dma.vmem_to_hbm [thread:$0]  %s1804_s25, 3072, %s3110_s9, [#allocation4], %s2482_s2, %s2482_s2, %s2483_s27   ;;  %v1780_v39 = vadd.f32 %v1764_v58, %v3011_v16  ;;  %v1765_v28 = vsel %vm1733_vm15, %v1717_v9, %v1749_v1 }
 0x358   :  { %v1781_v33 = vadd.f32 %v1765_v28, %v3018_v18  ;;  %s2441_s19 = scalar_lea.vmem %s1828_s14, 2048  ;;  %p2446_p9 = scmp.lt.s32.totalorder %s1828_s14, %s1828_s14 }
 0x359   :  { %1796 = vst [vmem:[#allocation16 + $0x70] sm:$0xff] %v1780_v39  ;;  %p2442_p8 = scmp.ne.s32.totalorder %s1828_s14, %s2441_s19  ;;  %p2447_p10 = scmp.lt.s32.totalorder %s2441_s19, %s2441_s19 }
 0x35a   :  { %1797 = vst [vmem:[#allocation16 + $0x78] sm:$0xff] %v1781_v33 }
 0x35b   :  { %p2448_p11 = por %p2447_p10, %p2446_p9 }
 0x35d   :  { %p2449_p12 = pnand %p2448_p11, %p2442_p8 }
 0x35f   :  { %2452 = shalt.err (!%p2449_p12)
}
 0x360   :  { %s2453_s9 = scalar_lea.hbm %s3112_s11, 2048 }
 0x361   :  { %p2454_p13 = scmp.ne.s32.totalorder %s3112_s11, %s2453_s9  ;;  %p2457_p0 = scmp.lt.u32.totalorder %s2453_s9, %s3112_s11 }
 0x363   :  { %p2459_p1 = pnand %p2457_p0, %p2454_p13 }
 0x365   :  { %2462 = shalt.err (!%p2459_p1)
}
 0x366   :  { %1833 = dma.vmem_to_hbm [thread:$0]  %s1828_s14, 2048, %s3112_s11, [#allocation15], %s2477_s29, %s2477_s29, %s2478_s30  }
 0x367   :  { %2471 = dma.done.wait [#allocation4], 3072  }
 0x368   :  { %2472 = vsyncadd [#allocation4], 4294964224 }
 0x369   :  { %2473 = dma.done.wait [#allocation15], 4096  }
 0x36a   :  { %2474 = vsyncadd [#allocation15], 4294963200 }
 0x36b   :  { %1843 = vsyncpa [#allocation3], 1 }
 0x36c   :  { %1844 = vsyncpa [#allocation6], 1 }
 0x36d   :  { %1845 = vsyncpa [#allocation9], 1 }
 0x36e   :  { %1846 = vsyncpa [#allocation12], 1 }
 0x36f   :  { %1847 = vsyncpa [#allocation4], 1 }
 0x370   :  { %1848 = vsyncpa [#allocation15], 1 }

</bundles_post_ra>
